<compile_context>
chip_gen: v7x
topology: tpu7x:2x2x1
jax: 0.10.0
libtpu: 0.0.40
codegen_flags: <defaults>
</compile_context>

<pallas_src>
import math
from functools import partial

import jax
import jax.numpy as jnp
from jax import lax
from jax.experimental import pallas as pl
from jax.experimental.pallas import tpu as pltpu


def autopad(k, p=None):
    if p is None:
        p = k // 2 if isinstance(k, int) else [x // 2 for x in k]
    return p


def _mish(x):
    # Mish(x) = x * tanh(softplus(x)) = x * (t^2 + 2t) / (t^2 + 2t + 2), t=e^x.
    # Exact identity, one exp + one divide (EUP is the scarce slot).  The clamp
    # at 20 is required for overflow safety; the ratio saturates to 1 there.
    t = jnp.exp(jnp.minimum(x, 20.0))
    u = t * t + 2.0 * t
    return x * (u / (u + 2.0))


def _vmem_budget():
    """(scratch/block budget, scoped vmem limit) in bytes for this chip."""
    try:
        cap = int(pltpu.get_tpu_info().vmem_capacity_bytes)
    except Exception:
        cap = 64 * 1024 * 1024          # conservative fallback (v7x per-core)
    return int(cap * 0.55), int(cap * 0.85)


# ----------------------------------------------------------------------------
# Kernel A: 1x1 conv (pixel x cout tiled channel matmul) + BN shift + Mish
#   x: (TM, cin)   w: (cin, TN) [BN scale pre-folded]   shift: (1, TN)
# ----------------------------------------------------------------------------
def _pw_conv_kernel(x_ref, w_ref, shift_ref, o_ref, *, act):
    y = jnp.dot(x_ref[...], w_ref[...], preferred_element_type=jnp.float32)
    y = y + shift_ref[...]
    if act:
        y = _mish(y)
    o_ref[...] = y.astype(o_ref.dtype)


def pointwise_conv_bn_act(x_nhwc, w2, shift, *, act, out_dtype,
                          tile_m=1024, tile_n=256):
    N, H, W, cin = x_nhwc.shape
    cout = w2.shape[-1]
    M = N * H * W
    budget, vmem_limit = _vmem_budget()
    in_isz = jnp.dtype(x_nhwc.dtype).itemsize
    out_isz = jnp.dtype(out_dtype).itemsize

    tn = cout if cout <= tile_n else tile_n          # tile_n is a mult. of 128
    tm = M if M <= tile_m else tile_m                # tile_m is a mult. of 8
    while 8 < tm < M:                                # shrink to the VMEM budget
        est = (2 * tm * cin * in_isz + 2 * cin * tn * in_isz
               + 2 * tm * tn * out_isz + tm * tn * 4)
        if est <= budget:
            break
        tm //= 2

    xm = x_nhwc.reshape(M, cin)
    out = pl.pallas_call(
        partial(_pw_conv_kernel, act=act),
        out_shape=jax.ShapeDtypeStruct((M, cout), out_dtype),
        # cout-tiles outer so the weight block stays resident over the M sweep.
        grid=(pl.cdiv(cout, tn), pl.cdiv(M, tm)),
        in_specs=[
            pl.BlockSpec((tm, cin), lambda j, i: (i, 0)),
            pl.BlockSpec((cin, tn), lambda j, i: (0, j)),
            pl.BlockSpec((1, tn), lambda j, i: (0, j)),
        ],
        out_specs=pl.BlockSpec((tm, tn), lambda j, i: (i, j)),
        compiler_params=pltpu.CompilerParams(
            dimension_semantics=("parallel", "parallel"),
            vmem_limit_bytes=vmem_limit),
    )(xm, w2, shift.reshape(1, cout))
    return out.reshape(N, H, W, cout)


# ----------------------------------------------------------------------------
# Kernel B: k x k conv (stride 1, "same" padding), row-tiled.  The unpadded
# input stays in HBM (pl.ANY); valid rows are fetched by manually
# double-buffered DMAs (main rows + conditional top/bottom halo rows) and the
# zero border is filled in VMEM.  Conv = direct per-tap MXU accumulation,
# fused BN shift + Mish.
# ----------------------------------------------------------------------------
def _conv_kxk_kernel(x_hbm, w_ref, shift_ref, o_ref, xwin, xpad, sem,
                     *, k, p, th, hwin, W, wp, cin, cout, act):
    b = pl.program_id(0)
    r = pl.program_id(1)
    nr = pl.num_programs(1)
    slot = lax.rem(r, 2)

    # Issue / wait use *identical* descriptors and conditions (fragile-wait fix).
    def start_dmas(rt, dst_slot):
        pltpu.make_async_copy(
            x_hbm.at[b, pl.ds(rt * th, th)],
            xwin.at[dst_slot, pl.ds(p, th)],
            sem.at[dst_slot, 0]).start()

        @pl.when(rt > 0)                      # top halo rows exist
        def _():
            pltpu.make_async_copy(
                x_hbm.at[b, pl.ds(rt * th - p, p)],
                xwin.at[dst_slot, pl.ds(0, p)],
                sem.at[dst_slot, 1]).start()

        @pl.when(rt < nr - 1)                 # bottom halo rows exist
        def _():
            pltpu.make_async_copy(
                x_hbm.at[b, pl.ds((rt + 1) * th, p)],
                xwin.at[dst_slot, pl.ds(p + th, p)],
                sem.at[dst_slot, 2]).start()

    def wait_dmas(rt, dst_slot):
        pltpu.make_async_copy(
            x_hbm.at[b, pl.ds(rt * th, th)],
            xwin.at[dst_slot, pl.ds(p, th)],
            sem.at[dst_slot, 0]).wait()

        @pl.when(rt > 0)
        def _():
            pltpu.make_async_copy(
                x_hbm.at[b, pl.ds(rt * th - p, p)],
                xwin.at[dst_slot, pl.ds(0, p)],
                sem.at[dst_slot, 1]).wait()

        @pl.when(rt < nr - 1)
        def _():
            pltpu.make_async_copy(
                x_hbm.at[b, pl.ds((rt + 1) * th, p)],
                xwin.at[dst_slot, pl.ds(p + th, p)],
                sem.at[dst_slot, 2]).wait()

    # Cold start: first row tile of each image has no prefetch behind it.
    # TODO(synk): prefetch across the image boundary ((b+1, 0)) as well.
    @pl.when(r == 0)
    def _():
        start_dmas(0, slot)

    # Prefetch the next row tile of the same image into the other slot (that
    # slot's previous DMAs were waited for on the previous grid step).
    @pl.when(r + 1 < nr)
    def _():
        start_dmas(r + 1, 1 - slot)

    # Wait for this row tile's rows.
    wait_dmas(r, slot)

    # Assemble the zero-padded window in VMEM (no host-side jnp.pad pass):
    # interior <- DMA'd rows, pad columns <- 0, halo rows <- 0 at image borders.
    xpad[:, p:p + W, :] = xwin[slot]
    xpad[:, 0:p, :] = jnp.zeros((hwin, p, cin), xpad.dtype)
    xpad[:, p + W:, :] = jnp.zeros((hwin, p, cin), xpad.dtype)

    @pl.when(r == 0)
    def _():
        xpad[0:p, :, :] = jnp.zeros((p, wp, cin), xpad.dtype)

    @pl.when(r == nr - 1)
    def _():
        xpad[p + th:, :, :] = jnp.zeros((p, wp, cin), xpad.dtype)

    # Direct k*k tap accumulation on the MXU (no im2col patch).
    # TODO(synk): for very small cin an im2col variant would fill the MXU better.
    y = None
    for dy in range(k):
        for dx in range(k):
            blk = xpad[dy:dy + th, dx:dx + W, :].reshape(th * W, cin)
            d = jnp.dot(blk, w_ref[dy, dx], preferred_element_type=jnp.float32)
            y = d if y is None else y + d

    y = y + shift_ref[...]
    if act:
        y = _mish(y)
    o_ref[0] = y.reshape(th, W, cout).astype(o_ref.dtype)


def _pick_row_tile(H, W, cin, cout, k, in_isz, out_isz, budget):
    p = k // 2
    wp = W + 2 * p
    candidates = [d for d in range(1, min(H, 256) + 1) if H % d == 0 and d >= p]
    for th in sorted(candidates, reverse=True):
        hwin = th + 2 * p
        est = (2 * hwin * W * cin * in_isz        # halo double buffer
               + hwin * wp * cin * in_isz         # zero-padded window scratch
               + 2 * k * k * cin * cout * in_isz  # weight (2 pipeline buffers)
               + 2 * th * W * cout * out_isz      # output block (2 buffers)
               + 2 * th * W * cout * 4)           # f32 accumulator + headroom
        if est <= budget:
            return th
    return min(candidates) if candidates else H


def conv_kxk_bn_act(x_nhwc, w, shift, *, k, act, out_dtype, row_tile=None):
    N, H, W, cin = x_nhwc.shape
    cout = w.shape[-1]
    p = k // 2
    wp = W + 2 * p
    budget, vmem_limit = _vmem_budget()
    in_isz = jnp.dtype(x_nhwc.dtype).itemsize
    out_isz = jnp.dtype(out_dtype).itemsize

    if row_tile is None:
        row_tile = _pick_row_tile(H, W, cin, cout, k, in_isz, out_isz, budget)
    # TODO(synk): ragged last row tile (H % row_tile != 0) via pl.cdiv + masking.
    assert H % row_tile == 0, "row_tile must divide the output height"
    assert row_tile >= p, "row_tile must be >= k//2 (single-tile halo)"
    th = row_tile
    hwin = th + 2 * p
    nr = H // th

    kernel = partial(_conv_kxk_kernel, k=k, p=p, th=th, hwin=hwin, W=W, wp=wp,
                     cin=cin, cout=cout, act=act)
    return pl.pallas_call(
        kernel,
        out_shape=jax.ShapeDtypeStruct((N, H, W, cout), out_dtype),
        grid=(N, nr),
        in_specs=[
            pl.BlockSpec(memory_space=pl.ANY),                # unpadded input, HBM
            pl.BlockSpec((k, k, cin, cout), lambda b, r: (0, 0, 0, 0)),
            pl.BlockSpec((1, cout), lambda b, r: (0, 0)),
        ],
        out_specs=pl.BlockSpec((1, th, W, cout), lambda b, r: (b, r, 0, 0)),
        scratch_shapes=[
            pltpu.VMEM((2, hwin, W, cin), x_nhwc.dtype),      # halo double buffer
            pltpu.VMEM((hwin, wp, cin), x_nhwc.dtype),        # zero-padded window
            pltpu.SemaphoreType.DMA((2, 3)),                  # [slot, main/top/bot]
        ],
        compiler_params=pltpu.CompilerParams(
            dimension_semantics=("parallel", "arbitrary"),
            vmem_limit_bytes=vmem_limit),
    )(x_nhwc, w, shift.reshape(1, cout))


# ----------------------------------------------------------------------------
# ConvNP forward
# ----------------------------------------------------------------------------
def convnp_forward_nhwc(x_nhwc, params, *, k=1, s=1, p=None, g=1, act=True,
                        row_tile=None, matmul_dtype=jnp.bfloat16,
                        out_dtype=None):
    """ConvNP.forward on NHWC input: Mish(BatchNorm2d(Conv2d(x, bias=False))).

    Chained ConvNP layers should call this entry point to avoid per-layer
    NCHW<->NHWC transposes (each transpose is a full extra HBM pass).
    """
    # TODO(synk): grouped conv (g > 1) is not implemented in the Pallas path.
    assert g == 1, "only groups=1 is supported"
    pad = autopad(k, p)
    w, scale, shift = params["w"], params["scale"], params["shift"]
    if out_dtype is None:
        out_dtype = matmul_dtype

    x = x_nhwc.astype(matmul_dtype)
    # Fold the inference-mode BN scale into the conv weight (free, host side).
    w_f = (w.astype(jnp.float32) * scale[None, None, None, :]).astype(matmul_dtype)
    shift = shift.astype(jnp.float32)

    if k == 1 and pad == 0:
        if s > 1:                       # 1x1/stride-s conv == subsample then 1x1
            x = x[:, ::s, ::s, :]
        cin, cout = w.shape[2], w.shape[3]
        y = pointwise_conv_bn_act(x, w_f.reshape(cin, cout), shift, act=act,
                                  out_dtype=out_dtype)
    else:
        # TODO(synk): stride > 1 with k > 1 is not implemented in the Pallas path.
        assert s == 1, "k > 1 requires stride 1 in this implementation"
        assert k % 2 == 1 and pad == k // 2, "k x k path assumes 'same' padding"
        y = conv_kxk_bn_act(x, w_f, shift, k=k, act=act, out_dtype=out_dtype,
                            row_tile=row_tile)
    return y


def convnp_forward(x_nchw, params, **kw):
    """NCHW in / NCHW out (PyTorch layout) wrapper around the NHWC kernels."""
    x = jnp.transpose(x_nchw, (0, 2, 3, 1))
    y = convnp_forward_nhwc(x, params, **kw)
    return jnp.transpose(y, (0, 3, 1, 2))


# ----------------------------------------------------------------------------
# Deterministic synthetic parameters + pure-JAX reference
# ----------------------------------------------------------------------------
def make_convnp_params(key, c1, c2, k=1, eps=1e-5):
    kw, kg, kb, km, kv = jax.random.split(key, 5)
    fan_in = c1 * k * k
    w = jax.random.normal(kw, (k, k, c1, c2), jnp.float32) / math.sqrt(fan_in)
    gamma = jax.random.uniform(kg, (c2,), jnp.float32, 0.5, 1.5)
    beta = 0.1 * jax.random.normal(kb, (c2,), jnp.float32)
    mean = 0.1 * jax.random.normal(km, (c2,), jnp.float32)
    var = jax.random.uniform(kv, (c2,), jnp.float32, 0.5, 1.5)
    scale = gamma / jnp.sqrt(var + eps)
    shift = beta - mean * scale
    return {"w": w, "scale": scale, "shift": shift}


def convnp_reference(x_nchw, params, *, k=1, s=1, p=None, act=True):
    pad = autopad(k, p)
    w, scale, shift = params["w"], params["scale"], params["shift"]
    x = jnp.transpose(x_nchw, (0, 2, 3, 1)).astype(jnp.float32)
    N, H, W, _ = x.shape
    cout = w.shape[-1]
    xp = jnp.pad(x, ((0, 0), (pad, pad), (pad, pad), (0, 0)))
    Ho = (H + 2 * pad - k) // s + 1
    Wo = (W + 2 * pad - k) // s + 1
    y = jnp.zeros((N, Ho, Wo, cout), jnp.float32)
    for dy in range(k):
        for dx in range(k):
            xs = xp[:, dy:dy + (Ho - 1) * s + 1:s, dx:dx + (Wo - 1) * s + 1:s, :]
            y = y + jnp.einsum("nhwi,io->nhwo", xs, w[dy, dx],
                               precision=jax.lax.Precision.HIGHEST)
    y = y * scale + shift
    if act:
        y = y * jnp.tanh(jax.nn.softplus(y))
    return jnp.transpose(y, (0, 3, 1, 2))


if __name__ == "__main__":
    key = jax.random.PRNGKey(0)
    kx, kp1, kp3 = jax.random.split(key, 3)

    N, C1, H, W = 2, 4, 16, 16
    C2 = 8
    x = jax.random.normal(kx, (N, C1, H, W), jnp.float32)

    # 1x1 ConvNP (pixel x cout tiled pointwise kernel), f32 operands/output.
    p1 = make_convnp_params(kp1, C1, C2, k=1)
    y1 = jax.block_until_ready(
        convnp_forward(x, p1, k=1, s=1, act=True,
                       matmul_dtype=jnp.float32, out_dtype=jnp.float32))
    r1 = convnp_reference(x, p1, k=1, s=1, act=True)
    assert y1.shape == (N, C2, H, W), y1.shape
    err1 = float(jnp.max(jnp.abs(y1 - r1)))

    # 3x3 ConvNP, f32, 2 row tiles -> exercises the halo DMA double buffer.
    p3 = make_convnp_params(kp3, C1, C2, k=3)
    y3 = jax.block_until_ready(
        convnp_forward(x, p3, k=3, s=1, act=True, row_tile=8,
                       matmul_dtype=jnp.float32, out_dtype=jnp.float32))
    r3 = convnp_reference(x, p3, k=3, s=1, act=True)
    assert y3.shape == (N, C2, H, W), y3.shape
    err3 = float(jnp.max(jnp.abs(y3 - r3)))

    # Default production path: bf16 matmul + bf16 output, auto row tile.
    yb = jax.block_until_ready(convnp_forward(x, p3, k=3, s=1, act=True))
    errb = float(jnp.max(jnp.abs(yb.astype(jnp.float32) - r3)))

    assert bool(jnp.all(jnp.isfinite(y1))) and bool(jnp.all(jnp.isfinite(y3)))
    assert bool(jnp.all(jnp.isfinite(yb.astype(jnp.float32))))
    assert err1 < 5e-2 and err3 < 5e-2, (err1, err3)
    assert errb < 2.5e-1, errb
    print("KERNEL_OK")
</pallas_src>

<mosaic_0001>
module attributes {stable_mosaic.version = 11 : i64} {
  func.func @_pw_conv_kernel(%arg0: i32, %arg1: i32, %arg2: memref<512x4xf32, #tpu.memory_space<vmem>>, %arg3: memref<4x8xf32, #tpu.memory_space<vmem>>, %arg4: memref<1x8xf32, #tpu.memory_space<vmem>>, %arg5: memref<512x8xf32, #tpu.memory_space<vmem>>) attributes {dimension_semantics = [#tpu.dimension_semantics<parallel>, #tpu.dimension_semantics<parallel>], iteration_bounds = array<i64: 1, 1>, scalar_prefetch = 0 : i64, scratch_operands = 0 : i64, tpu.core_type = #tpu.core_type<tc>, window_params = [{transform_indices = @transform_0, window_bounds = array<i64: 512, 4>}, {transform_indices = @transform_1, window_bounds = array<i64: 4, 8>}, {transform_indices = @transform_2, window_bounds = array<i64: 1, 8>}, {transform_indices = @transform_3, window_bounds = array<i64: 512, 8>}]} {
    %c0 = arith.constant 0 : index
    %c0_0 = arith.constant 0 : index
    %0 = vector.load %arg2[%c0, %c0_0] : memref<512x4xf32, #tpu.memory_space<vmem>>, vector<512x4xf32>
    %c0_1 = arith.constant 0 : index
    %c0_2 = arith.constant 0 : index
    %1 = vector.load %arg3[%c0_1, %c0_2] : memref<4x8xf32, #tpu.memory_space<vmem>>, vector<4x8xf32>
    %cst = arith.constant dense<0.000000e+00> : vector<512x8xf32>
    %2 = tpu.matmul %0, %1, %cst {dimension_numbers = #tpu.dot_dimension_numbers<[1], [0], [0], [1], [0, 0, 1, 1], [], []>} : vector<512x4xf32>, vector<4x8xf32>, vector<512x8xf32> -> vector<512x8xf32>
    %c0_3 = arith.constant 0 : index
    %c0_4 = arith.constant 0 : index
    %3 = vector.load %arg4[%c0_3, %c0_4] : memref<1x8xf32, #tpu.memory_space<vmem>>, vector<1x8xf32>
    %4 = vector.broadcast %3 : vector<1x8xf32> to vector<512x8xf32>
    %5 = arith.addf %2, %4 : vector<512x8xf32>
    %cst_5 = arith.constant 2.000000e+01 : f32
    %6 = vector.broadcast %cst_5 : f32 to vector<512x8xf32>
    %7 = arith.minimumf %5, %6 : vector<512x8xf32>
    %8 = math.exp %7 : vector<512x8xf32>
    %9 = arith.mulf %8, %8 : vector<512x8xf32>
    %cst_6 = arith.constant 2.000000e+00 : f32
    %10 = vector.broadcast %cst_6 : f32 to vector<512x8xf32>
    %11 = arith.mulf %10, %8 : vector<512x8xf32>
    %12 = arith.addf %9, %11 : vector<512x8xf32>
    %cst_7 = arith.constant 2.000000e+00 : f32
    %13 = vector.broadcast %cst_7 : f32 to vector<512x8xf32>
    %14 = arith.addf %12, %13 : vector<512x8xf32>
    %15 = arith.divf %12, %14 : vector<512x8xf32>
    %16 = arith.mulf %5, %15 : vector<512x8xf32>
    %c0_8 = arith.constant 0 : index
    %c0_9 = arith.constant 0 : index
    %17 = vector.load %arg5[%c0_8, %c0_9] : memref<512x8xf32, #tpu.memory_space<vmem>>, vector<512x8xf32>
    tpu.vector_store %arg5[%c0_8, %c0_9], %16 {strides = array<i32>} : memref<512x8xf32, #tpu.memory_space<vmem>>, vector<512x8xf32>,
    return
  }
  func.func @transform_0(%arg0: i32, %arg1: i32) -> (i32, i32) {
    %c0_i32 = arith.constant 0 : i32
    %c0_i32_0 = arith.constant 0 : i32
    return %arg1, %c0_i32 : i32, i32
  }
  func.func @transform_1(%arg0: i32, %arg1: i32) -> (i32, i32) {
    %c0_i32 = arith.constant 0 : i32
    %c0_i32_0 = arith.constant 0 : i32
    return %c0_i32, %arg0 : i32, i32
  }
  func.func @transform_2(%arg0: i32, %arg1: i32) -> (i32, i32) {
    %c0_i32 = arith.constant 0 : i32
    %c0_i32_0 = arith.constant 0 : i32
    return %c0_i32, %arg0 : i32, i32
  }
  func.func @transform_3(%arg0: i32, %arg1: i32) -> (i32, i32) {
    %c0_i32 = arith.constant 0 : i32
    return %arg1, %arg0 : i32, i32
  }
}

</mosaic_0001>

<bundles_post_ra>
// kernel: tpu_custom_call.1
= control target key start
LH: loop header
LB: loop body
LE: loop exit
PB: predicated region body
PF: predicated region fallthrough
CT: control target
= control target key end

     0   :  { %vm279_vm0 = vcmask 1043456   ;;  %vm86_vm1 = vcmask 31744   ;;  %vm1308_vm2 = vcmask 64512   ;;  %s3099_s1 = inlined_call_operand.vmem [shape: f32[4,8], index: 1, kind: input, shape index: {}]   ;;  %s3100_s0 = inlined_call_operand.vmem [shape: f32[512,4], index: 0, kind: input, shape index: {}]   ;;  %s3101_s2 = inlined_call_operand.vmem [shape: f32[1,8], index: 2, kind: input, shape index: {}]   ;;  %s3102_s3 = inlined_call_operand.vmem [shape: f32[512,8], index: 3, kind: output, shape index: {}]  }
   0x1   :  { %v78_v0 = vld [vmem:[%s3099_s1] sm:$0xf]  ;;  %v15_v3 = vld [vmem:[%s3100_s0 + $0x8] sm:$0xff]  ;;  %v16_v5 = vld [vmem:[%s3100_s0 + $0x10] sm:$0xff] }
   0x2   :  { %v14_v1 = vld [vmem:[%s3100_s0] sm:$0xff]  ;;  %1508 = vmatprep.subr.msk.mxu0 %vm279_vm0, %v78_v0  ;;  %1606 = vmatprep.subr.msk.mxu1 %vm279_vm0, %v78_v0  ;;  %v47_v4 = vld [vmem:[%s3100_s0 + $0x108] sm:$0xff]  ;;  %v48_v6 = vld [vmem:[%s3100_s0 + $0x110] sm:$0xff] }
   0x3   :  { %v46_v2 = vld [vmem:[%s3100_s0 + $0x100] sm:$0xff]  ;;  %1509 = vmatpush3.msk.msra.mxu0 %vm279_vm0, %v78_v0  ;;  %1607 = vmatpush3.msk.msra.mxu1 %vm279_vm0, %v78_v0  ;;  %v17_v7 = vld [vmem:[%s3100_s0 + $0x18] sm:$0xff]  ;;  %v19_v11 = vld [vmem:[%s3100_s0 + $0x28] sm:$0xff] }
   0x4   :  { %1510 = vmatprep.mubr.msk.f32.mxu0 %vm86_vm1, %v14_v1  ;;  %1558 = vmatprep.mubr.msk.f32.mxu1 %vm86_vm1, %v46_v2  ;;  %v49_v8 = vld [vmem:[%s3100_s0 + $0x118] sm:$0xff]  ;;  %v18_v9 = vld [vmem:[%s3100_s0 + $0x20] sm:$0xff]  ;;  %v51_v12 = vld [vmem:[%s3100_s0 + $0x128] sm:$0xff] }
   0x5   :  { %1511 = vmatmul.mubr.msk.f32.vlgmr.msra.gmra.mrb[0].mxu0 %vm86_vm1, %v15_v3  ;;  %1559 = vmatmul.mubr.msk.f32.vlgmr.msra.gmra.mrb[0].mxu1 %vm86_vm1, %v47_v4  ;;  %v50_v10 = vld [vmem:[%s3100_s0 + $0x120] sm:$0xff]  ;;  %v20_v13 = vld [vmem:[%s3100_s0 + $0x30] sm:$0xff]  ;;  %v21_v15 = vld [vmem:[%s3100_s0 + $0x38] sm:$0xff] }
   0x6   :  { %1513 = vmatprep.mubr.msk.f32.mxu0 %vm86_vm1, %v16_v5  ;;  %1561 = vmatprep.mubr.msk.f32.mxu1 %vm86_vm1, %v48_v6  ;;  %v52_v14 = vld [vmem:[%s3100_s0 + $0x130] sm:$0xff]  ;;  %v53_v16 = vld [vmem:[%s3100_s0 + $0x138] sm:$0xff]  ;;  %v22_v17 = vld [vmem:[%s3100_s0 + $0x40] sm:$0xff] }
   0x7   :  { %v54_v18 = vld [vmem:[%s3100_s0 + $0x140] sm:$0xff]  ;;  %v23_v19 = vld [vmem:[%s3100_s0 + $0x48] sm:$0xff]  ;;  %v24_v21 = vld [vmem:[%s3100_s0 + $0x50] sm:$0xff] }
   0x8   :  { %v55_v20 = vld [vmem:[%s3100_s0 + $0x148] sm:$0xff]  ;;  %v56_v22 = vld [vmem:[%s3100_s0 + $0x150] sm:$0xff]  ;;  %v25_v23 = vld [vmem:[%s3100_s0 + $0x58] sm:$0xff] }
   0x9   :  { %1514 = vmatmul.mubr.msk.f32.gmra.mrb[2].mxu0 %vm86_vm1, %v17_v7  ;;  %1562 = vmatmul.mubr.msk.f32.gmra.mrb[2].mxu1 %vm86_vm1, %v49_v8  ;;  %v57_v24 = vld [vmem:[%s3100_s0 + $0x158] sm:$0xff]  ;;  %v26_v25 = vld [vmem:[%s3100_s0 + $0x60] sm:$0xff]  ;;  %v27_v27 = vld [vmem:[%s3100_s0 + $0x68] sm:$0xff] }
   0xa   :  { %1516 = vmatprep.mubr.msk.f32.mxu0 %vm86_vm1, %v18_v9  ;;  %1564 = vmatprep.mubr.msk.f32.mxu1 %vm86_vm1, %v50_v10  ;;  %v58_v26 = vld [vmem:[%s3100_s0 + $0x160] sm:$0xff]  ;;  %v59_v28 = vld [vmem:[%s3100_s0 + $0x168] sm:$0xff]  ;;  %v28_v29 = vld [vmem:[%s3100_s0 + $0x70] sm:$0xff] }
   0xb   :  { %v60_v30 = vld [vmem:[%s3100_s0 + $0x170] sm:$0xff]  ;;  %v29_v31 = vld [vmem:[%s3100_s0 + $0x78] sm:$0xff]  ;;  %v30_v33 = vld [vmem:[%s3100_s0 + $0x80] sm:$0xff] }
   0xc   :  { %v61_v32 = vld [vmem:[%s3100_s0 + $0x178] sm:$0xff]  ;;  %v62_v34 = vld [vmem:[%s3100_s0 + $0x180] sm:$0xff]  ;;  %v31_v35 = vld [vmem:[%s3100_s0 + $0x88] sm:$0xff] }
   0xd   :  { %1517 = vmatmul.mubr.msk.f32.gmra.mrb[4].mxu0 %vm86_vm1, %v19_v11  ;;  %1565 = vmatmul.mubr.msk.f32.gmra.mrb[4].mxu1 %vm86_vm1, %v51_v12  ;;  %v63_v36 = vld [vmem:[%s3100_s0 + $0x188] sm:$0xff]  ;;  %v32_v37 = vld [vmem:[%s3100_s0 + $0x90] sm:$0xff]  ;;  %v33_v39 = vld [vmem:[%s3100_s0 + $0x98] sm:$0xff] }
   0xe   :  { %1519 = vmatprep.mubr.msk.f32.mxu0 %vm86_vm1, %v20_v13  ;;  %1567 = vmatprep.mubr.msk.f32.mxu1 %vm86_vm1, %v52_v14  ;;  %v64_v38 = vld [vmem:[%s3100_s0 + $0x190] sm:$0xff]  ;;  %v65_v40 = vld [vmem:[%s3100_s0 + $0x198] sm:$0xff]  ;;  %v34_v41 = vld [vmem:[%s3100_s0 + $0xa0] sm:$0xff] }
   0xf   :  { %v66_v42 = vld [vmem:[%s3100_s0 + $0x1a0] sm:$0xff]  ;;  %v35_v43 = vld [vmem:[%s3100_s0 + $0xa8] sm:$0xff]  ;;  %v36_v45 = vld [vmem:[%s3100_s0 + $0xb0] sm:$0xff] }
  0x10   :  { %v67_v44 = vld [vmem:[%s3100_s0 + $0x1a8] sm:$0xff]  ;;  %v68_v46 = vld [vmem:[%s3100_s0 + $0x1b0] sm:$0xff]  ;;  %v37_v47 = vld [vmem:[%s3100_s0 + $0xb8] sm:$0xff] }
  0x11   :  { %1520 = vmatmul.mubr.msk.f32.gmra.mrb[6].mxu0 %vm86_vm1, %v21_v15  ;;  %1568 = vmatmul.mubr.msk.f32.gmra.mrb[6].mxu1 %vm86_vm1, %v53_v16  ;;  %v69_v48 = vld [vmem:[%s3100_s0 + $0x1b8] sm:$0xff]  ;;  %v38_v49 = vld [vmem:[%s3100_s0 + $0xc0] sm:$0xff]  ;;  %v39_v51 = vld [vmem:[%s3100_s0 + $0xc8] sm:$0xff] }
  0x12   :  { %1522 = vmatprep.mubr.msk.f32.mxu0 %vm86_vm1, %v22_v17  ;;  %1570 = vmatprep.mubr.msk.f32.mxu1 %vm86_vm1, %v54_v18  ;;  %v70_v50 = vld [vmem:[%s3100_s0 + $0x1c0] sm:$0xff]  ;;  %v71_v52 = vld [vmem:[%s3100_s0 + $0x1c8] sm:$0xff]  ;;  %v40_v53 = vld [vmem:[%s3100_s0 + $0xd0] sm:$0xff] }
  0x13   :  { %v72_v54 = vld [vmem:[%s3100_s0 + $0x1d0] sm:$0xff]  ;;  %v41_v55 = vld [vmem:[%s3100_s0 + $0xd8] sm:$0xff]  ;;  %v42_v57 = vld [vmem:[%s3100_s0 + $0xe0] sm:$0xff] }
  0x14   :  { %v73_v56 = vld [vmem:[%s3100_s0 + $0x1d8] sm:$0xff]  ;;  %v74_v58 = vld [vmem:[%s3100_s0 + $0x1e0] sm:$0xff]  ;;  %v43_v59 = vld [vmem:[%s3100_s0 + $0xe8] sm:$0xff] }
  0x15   :  { %1523 = vmatmul.mubr.msk.f32.gmra.mrb[8].mxu0 %vm86_vm1, %v23_v19  ;;  %1571 = vmatmul.mubr.msk.f32.gmra.mrb[8].mxu1 %vm86_vm1, %v55_v20  ;;  %v75_v60 = vld [vmem:[%s3100_s0 + $0x1e8] sm:$0xff]  ;;  %v44_v61 = vld [vmem:[%s3100_s0 + $0xf0] sm:$0xff]  ;;  %v45_v63 = vld [vmem:[%s3100_s0 + $0xf8] sm:$0xff] }
  0x16   :  { %1525 = vmatprep.mubr.msk.f32.mxu0 %vm86_vm1, %v24_v21  ;;  %1573 = vmatprep.mubr.msk.f32.mxu1 %vm86_vm1, %v56_v22  ;;  %v76_v62 = vld [vmem:[%s3100_s0 + $0x1f0] sm:$0xff]  ;;  %v77_v0 = vld [vmem:[%s3100_s0 + $0x1f8] sm:$0xff]  ;;  %v2147_v1 = vld [vmem:[%s3101_s2] ss:$0 sm:$0xff] }
  0x19   :  { %1526 = vmatmul.mubr.msk.f32.gmra.mrb[10].mxu0 %vm86_vm1, %v25_v23  ;;  %1574 = vmatmul.mubr.msk.f32.gmra.mrb[10].mxu1 %vm86_vm1, %v57_v24 }
  0x1a   :  { %1528 = vmatprep.mubr.msk.f32.mxu0 %vm86_vm1, %v26_v25  ;;  %1576 = vmatprep.mubr.msk.f32.mxu1 %vm86_vm1, %v58_v26 }
  0x1d   :  { %1529 = vmatmul.mubr.msk.f32.gmra.mrb[12].mxu0 %vm86_vm1, %v27_v27  ;;  %1577 = vmatmul.mubr.msk.f32.gmra.mrb[12].mxu1 %vm86_vm1, %v59_v28 }
  0x1e   :  { %1531 = vmatprep.mubr.msk.f32.mxu0 %vm86_vm1, %v28_v29  ;;  %1579 = vmatprep.mubr.msk.f32.mxu1 %vm86_vm1, %v60_v30 }
  0x21   :  { %1532 = vmatmul.mubr.msk.f32.gmra.mrb[14].mxu0 %vm86_vm1, %v29_v31  ;;  %1580 = vmatmul.mubr.msk.f32.gmra.mrb[14].mxu1 %vm86_vm1, %v61_v32 }
  0x22   :  { %1534 = vmatprep.mubr.msk.f32.mxu0 %vm86_vm1, %v30_v33  ;;  %1582 = vmatprep.mubr.msk.f32.mxu1 %vm86_vm1, %v62_v34 }
  0x25   :  { %1535 = vmatmul.mubr.msk.f32.gmra.mrb[16].mxu0 %vm86_vm1, %v31_v35  ;;  %1583 = vmatmul.mubr.msk.f32.gmra.mrb[16].mxu1 %vm86_vm1, %v63_v36 }
  0x26   :  { %1537 = vmatprep.mubr.msk.f32.mxu0 %vm86_vm1, %v32_v37  ;;  %1585 = vmatprep.mubr.msk.f32.mxu1 %vm86_vm1, %v64_v38 }
  0x29   :  { %1538 = vmatmul.mubr.msk.f32.gmra.mrb[18].mxu0 %vm86_vm1, %v33_v39  ;;  %1586 = vmatmul.mubr.msk.f32.gmra.mrb[18].mxu1 %vm86_vm1, %v65_v40 }
  0x2a   :  { %1540 = vmatprep.mubr.msk.f32.mxu0 %vm86_vm1, %v34_v41  ;;  %1588 = vmatprep.mubr.msk.f32.mxu1 %vm86_vm1, %v66_v42 }
  0x2d   :  { %1541 = vmatmul.mubr.msk.f32.gmra.mrb[20].mxu0 %vm86_vm1, %v35_v43  ;;  %1589 = vmatmul.mubr.msk.f32.gmra.mrb[20].mxu1 %vm86_vm1, %v67_v44 }
  0x2e   :  { %1543 = vmatprep.mubr.msk.f32.mxu0 %vm86_vm1, %v36_v45  ;;  %1591 = vmatprep.mubr.msk.f32.mxu1 %vm86_vm1, %v68_v46 }
  0x31   :  { %1544 = vmatmul.mubr.msk.f32.gmra.mrb[22].mxu0 %vm86_vm1, %v37_v47  ;;  %1592 = vmatmul.mubr.msk.f32.gmra.mrb[22].mxu1 %vm86_vm1, %v69_v48 }
  0x32   :  { %1546 = vmatprep.mubr.msk.f32.mxu0 %vm86_vm1, %v38_v49  ;;  %1594 = vmatprep.mubr.msk.f32.mxu1 %vm86_vm1, %v70_v50 }
  0x35   :  { %1547 = vmatmul.mubr.msk.f32.gmra.mrb[24].mxu0 %vm86_vm1, %v39_v51  ;;  %1595 = vmatmul.mubr.msk.f32.gmra.mrb[24].mxu1 %vm86_vm1, %v71_v52 }
  0x36   :  { %1549 = vmatprep.mubr.msk.f32.mxu0 %vm86_vm1, %v40_v53  ;;  %1597 = vmatprep.mubr.msk.f32.mxu1 %vm86_vm1, %v72_v54 }
  0x39   :  { %1550 = vmatmul.mubr.msk.f32.gmra.mrb[26].mxu0 %vm86_vm1, %v41_v55  ;;  %1598 = vmatmul.mubr.msk.f32.gmra.mrb[26].mxu1 %vm86_vm1, %v73_v56 }
  0x3a   :  { %1552 = vmatprep.mubr.msk.f32.mxu0 %vm86_vm1, %v42_v57  ;;  %1600 = vmatprep.mubr.msk.f32.mxu1 %vm86_vm1, %v74_v58 }
  0x3d   :  { %1553 = vmatmul.mubr.msk.f32.gmra.mrb[28].mxu0 %vm86_vm1, %v43_v59  ;;  %1601 = vmatmul.mubr.msk.f32.gmra.mrb[28].mxu1 %vm86_vm1, %v75_v60 }
  0x3e   :  { %1555 = vmatprep.mubr.msk.f32.mxu0 %vm86_vm1, %v44_v61  ;;  %1603 = vmatprep.mubr.msk.f32.mxu1 %vm86_vm1, %v76_v62 }
  0x41   :  { %1556 = vmatmul.mubr.msk.f32.gmra.mrb[30].mxu0 %vm86_vm1, %v45_v63  ;;  %1604 = vmatmul.mubr.msk.f32.gmra.mrb[30].mxu1 %vm86_vm1, %v77_v0 }
  0xd8   :  { %v1512_v2 = vpop.f32.mrb[0].mxu0  ;;  %v1560_v3 = vpop.f32.mrb[0].mxu1 }
  0xd9   :  { %v2150_v4 = vadd.f32 %v1512_v2, %v2147_v1  ;;  %v2153_v5 = vadd.f32 %v1560_v3, %v2147_v1  ;;  %v349_v6 = vpop.f32.mrb[1].mxu0  ;;  %v509_v7 = vpop.f32.mrb[1].mxu1 }
  0xda   :  { %v2156_v8 = vadd.f32 %v2147_v1, %v349_v6  ;;  %v2159_v9 = vadd.f32 %v2147_v1, %v509_v7 }
  0xdb   :  { %v669_v10 = vmin.f32 %v2150_v4, 20.0  ;;  %v701_v11 = vmin.f32 %v2153_v5, 20.0 }
  0xdc   :  { %v668_v12 = vmin.f32 %v2156_v8, 20.0  ;;  %v700_v13 = vmin.f32 %v2159_v9, 20.0  ;;  %v1515_v14 = vpop.f32.mrb[2].mxu0  ;;  %v1563_v15 = vpop.f32.mrb[2].mxu1 }
  0xdd   :  { %v734_v16 = vmul.f32 1.442695, %v669_v10  ;;  %v798_v17 = vmul.f32 1.442695, %v701_v11  ;;  %v2166_v18 = vadd.f32 %v1515_v14, %v2147_v1  ;;  %v2169_v19 = vadd.f32 %v1563_v15, %v2147_v1  ;;  %v359_v20 = vpop.f32.mrb[3].mxu0  ;;  %v519_v21 = vpop.f32.mrb[3].mxu1 }
  0xde   :  { %v732_v22 = vmul.f32 1.442695, %v668_v12  ;;  %v796_v23 = vmul.f32 1.442695, %v700_v13  ;;  %v2172_v24 = vadd.f32 %v2147_v1, %v359_v20  ;;  %v2175_v25 = vadd.f32 %v2147_v1, %v519_v21 }
  0xdf   :  { %1608 = vpow2.f32 %v734_v16  ;;  %v671_v26 = vmin.f32 %v2166_v18, 20.0  ;;  %v703_v27 = vmin.f32 %v2169_v19, 20.0 }
  0xe0   :  { %1610 = vpow2.f32 %v798_v17  ;;  %v670_v28 = vmin.f32 %v2172_v24, 20.0  ;;  %v702_v29 = vmin.f32 %v2175_v25, 20.0  ;;  %v1518_v30 = vpop.f32.mrb[4].mxu0  ;;  %v1566_v31 = vpop.f32.mrb[4].mxu1 }
  0xe1   :  { %1612 = vpow2.f32 %v732_v22  ;;  %v738_v32 = vmul.f32 1.442695, %v671_v26  ;;  %v802_v33 = vmul.f32 1.442695, %v703_v27  ;;  %v2182_v34 = vadd.f32 %v1518_v30, %v2147_v1  ;;  %v369_v35 = vpop.f32.mrb[5].mxu0  ;;  %v529_v36 = vpop.f32.mrb[5].mxu1 }
  0xe2   :  { %1614 = vpow2.f32 %v796_v23  ;;  %v736_v37 = vmul.f32 1.442695, %v670_v28  ;;  %v800_v38 = vmul.f32 1.442695, %v702_v29  ;;  %v2185_v39 = vadd.f32 %v1566_v31, %v2147_v1 }
  0xe3   :  { %1616 = vpow2.f32 %v738_v32  ;;  %v673_v40 = vmin.f32 %v2182_v34, 20.0  ;;  %v2189_v41 = vadd.f32 %v2147_v1, %v369_v35  ;;  %v2192_v42 = vadd.f32 %v2147_v1, %v529_v36 }
  0xe4   :  { %1618 = vpow2.f32 %v802_v33  ;;  %v705_v43 = vmin.f32 %v2185_v39, 20.0  ;;  %v1521_v44 = vpop.f32.mrb[6].mxu0  ;;  %v1569_v45 = vpop.f32.mrb[6].mxu1 }
  0xe5   :  { %1620 = vpow2.f32 %v736_v37  ;;  %v742_v46 = vmul.f32 1.442695, %v673_v40  ;;  %v672_v47 = vmin.f32 %v2189_v41, 20.0  ;;  %v704_v48 = vmin.f32 %v2192_v42, 20.0  ;;  %v379_v49 = vpop.f32.mrb[7].mxu0  ;;  %v539_v50 = vpop.f32.mrb[7].mxu1 }
  0xe6   :  { %1622 = vpow2.f32 %v800_v38  ;;  %v806_v51 = vmul.f32 1.442695, %v705_v43  ;;  %v2198_v52 = vadd.f32 %v1521_v44, %v2147_v1  ;;  %v2201_v53 = vadd.f32 %v1569_v45, %v2147_v1 }
  0xe7   :  { %1624 = vpow2.f32 %v742_v46  ;;  %v740_v54 = vmul.f32 1.442695, %v672_v47  ;;  %v804_v55 = vmul.f32 1.442695, %v704_v48  ;;  %v2204_v56 = vadd.f32 %v2147_v1, %v379_v49 }
  0xe8   :  { %1626 = vpow2.f32 %v806_v51  ;;  %v675_v57 = vmin.f32 %v2198_v52, 20.0  ;;  %v707_v58 = vmin.f32 %v2201_v53, 20.0  ;;  %v2209_v59 = vadd.f32 %v2147_v1, %v539_v50  ;;  %v1524_v60 = vpop.f32.mrb[8].mxu0  ;;  %v1572_v61 = vpop.f32.mrb[8].mxu1 }
  0xe9   :  { %v1609_v62 = vpop.eup %1608  ;;  %1628 = vpow2.f32 %v740_v54  ;;  %v674_v63 = vmin.f32 %v2204_v56, 20.0  ;;  %v2213_v0 = vadd.f32 %v1524_v60, %v2147_v1  ;;  %v2216_v2 = vadd.f32 %v1572_v61, %v2147_v1  ;;  %v2218_v3 = vpop.f32.mrb[9].mxu0 }
  0xea   :  { %v2220_v6 = vpop.f32.mrb[9].mxu1  ;;  %v1611_v7 = vpop.eup %1610  ;;  %v861_v10 = vmul.f32 %v1609_v62, %v1609_v62  ;;  %v925_v11 = vmul.f32 2.0, %v1609_v62  ;;  %1630 = vpow2.f32 %v804_v55  ;;  %v746_v12 = vmul.f32 1.442695, %v675_v57 }
  0xeb   :  { %v1613_v13 = vpop.eup %1612  ;;  %v893_v14 = vmul.f32 %v1611_v7, %v1611_v7  ;;  %v957_v15 = vmul.f32 2.0, %v1611_v7  ;;  %v810_v16 = vmul.f32 1.442695, %v707_v58  ;;  %v2222_v17 = vmul.f32 1.442695, %v674_v63 }
  0xec   :  { %v1615_v20 = vpop.eup %1614  ;;  %v2224_v21 = vadd.f32 %v925_v11, %v861_v10  ;;  %v860_v22 = vmul.f32 %v1613_v13, %v1613_v13  ;;  %v924_v23 = vmul.f32 2.0, %v1613_v13  ;;  %1632 = vpow2.f32 %v746_v12  ;;  %v2226_v26 = vpop.f32.mrb[10].mxu0 }
  0xed   :  { %v2228_v27 = vpop.f32.mrb[10].mxu1  ;;  %v1617_v28 = vpop.eup %1616  ;;  %v2230_v29 = vadd.f32 %v957_v15, %v893_v14  ;;  %v892_v30 = vmul.f32 %v1615_v20, %v1615_v20  ;;  %v956_v31 = vmul.f32 2.0, %v1615_v20  ;;  %1634 = vpow2.f32 %v810_v16 }
  0xee   :  { %v2232_v32 = vpop.f32.mrb[11].mxu0  ;;  %v2234_v33 = vpop.f32.mrb[11].mxu1  ;;  %v1053_v36 = vadd.f32 2.0, %v2224_v21  ;;  %v2237_v37 = vadd.f32 %v924_v23, %v860_v22  ;;  %v863_v38 = vmul.f32 %v1617_v28, %v1617_v28  ;;  %v927_v40 = vmul.f32 2.0, %v1617_v28 }
  0xef   :  { %v1619_v35 = vpop.eup %1618  ;;  %v1085_v44 = vadd.f32 2.0, %v2230_v29  ;;  %v2240_v45 = vadd.f32 %v956_v31, %v892_v30 }
  0xf0   :  { %v1621_v43 = vpop.eup %1620  ;;  %v895_v46 = vmul.f32 %v1619_v35, %v1619_v35  ;;  %v959_v47 = vmul.f32 2.0, %v1619_v35  ;;  %1636 = vrcp.f32 %v1053_v36  ;;  %v1052_v49 = vadd.f32 2.0, %v2237_v37  ;;  %v2245_v54 = vpop.f32.mrb[12].mxu0 }
  0xf1   :  { %v1623_v48 = vpop.eup %1622  ;;  %v2243_v50 = vadd.f32 %v927_v40, %v863_v38  ;;  %v862_v51 = vmul.f32 %v1621_v43, %v1621_v43  ;;  %v2247_v55 = vpop.f32.mrb[12].mxu1  ;;  %1638 = vrcp.f32 %v1085_v44  ;;  %v1084_v58 = vadd.f32 2.0, %v2240_v45 }
  0xf2   :  { %v1625_v57 = vpop.eup %1624  ;;  %v2250_v60 = vadd.f32 %v959_v47, %v895_v46  ;;  %v926_v61 = vmul.f32 2.0, %v1621_v43  ;;  %v2252_v62 = vpop.f32.mrb[13].mxu0  ;;  %1640 = vrcp.f32 %v1052_v49  ;;  %v894_v11 = vmul.f32 %v1623_v48, %v1623_v48 }
  0xf3   :  { %v2254_v63 = vpop.f32.mrb[13].mxu1  ;;  %v1627_v7 = vpop.eup %1626  ;;  %v1055_v10 = vadd.f32 2.0, %v2243_v50  ;;  %v958_v12 = vmul.f32 2.0, %v1623_v48  ;;  %1642 = vrcp.f32 %v1084_v58  ;;  %v865_v16 = vmul.f32 %v1625_v57, %v1625_v57 }
  0xf4   :  { %v1629_v13 = vpop.eup %1628  ;;  %v1087_v14 = vadd.f32 2.0, %v2250_v60  ;;  %v2258_v15 = vadd.f32 %v926_v61, %v862_v51  ;;  %v929_v23 = vmul.f32 2.0, %v1625_v57  ;;  %v897_v28 = vmul.f32 %v1627_v7, %v1627_v7  ;;  %v2262_v30 = vpop.f32.mrb[14].mxu0 }
  0xf5   :  { %v1631_v20 = vpop.eup %1630  ;;  %1644 = vrcp.f32 %v1055_v10  ;;  %v2260_v22 = vadd.f32 %v958_v12, %v894_v11  ;;  %v2264_v31 = vpop.f32.mrb[14].mxu1  ;;  %v961_v36 = vmul.f32 2.0, %v1627_v7  ;;  %v864_v38 = vmul.f32 %v1629_v13, %v1629_v13 }
  0xf6   :  { %1646 = vrcp.f32 %v1087_v14  ;;  %v1054_v35 = vadd.f32 2.0, %v2258_v15  ;;  %v2267_v40 = vpop.f32.mrb[15].mxu0  ;;  %v2269_v43 = vpop.f32.mrb[15].mxu1  ;;  %v2272_v47 = vadd.f32 %v929_v23, %v865_v16  ;;  %v928_v48 = vmul.f32 2.0, %v1629_v13 }
  0xf7   :  { %3103 = vst [vmem:[#allocation2_spill] sm:$0xff] %v2269_v43  ;;  %v1633_v44 = vpop.eup %1632  ;;  %v1086_v46 = vadd.f32 2.0, %v2260_v22  ;;  %v896_v49 = vmul.f32 %v1631_v20, %v1631_v20  ;;  %v2274_v57 = vadd.f32 %v961_v36, %v897_v28  ;;  %v960_v58 = vmul.f32 2.0, %v1631_v20 }
  0xf8   :  { %v1635_v51 = vpop.eup %1634  ;;  %1648 = vrcp.f32 %v1054_v35  ;;  %v867_v61 = vmul.f32 %v1633_v44, %v1633_v44  ;;  %v1057_v7 = vadd.f32 2.0, %v2272_v47  ;;  %v2277_v10 = vadd.f32 %v928_v48, %v864_v38  ;;  %v2279_v12 = vpop.f32.mrb[16].mxu0 }
  0xf9   :  { %1650 = vrcp.f32 %v1086_v46  ;;  %v931_v11 = vmul.f32 2.0, %v1633_v44  ;;  %3104 = vst [vmem:[#allocation3_spill] sm:$0xff] %v2279_v12  ;;  %v2281_v14 = vpop.f32.mrb[16].mxu1  ;;  %v1089_v16 = vadd.f32 2.0, %v2274_v57  ;;  %v2284_v13 = vadd.f32 %v960_v58, %v896_v49  ;;  %v2286_v28 = vpop.f32.mrb[17].mxu0 }
  0xfa   :  { %3105 = vst [vmem:[#allocation4_spill] sm:$0xff] %v2281_v14  ;;  %v899_v23 = vmul.f32 %v1635_v51, %v1635_v51  ;;  %v963_v35 = vmul.f32 2.0, %v1635_v51  ;;  %3106 = vst [vmem:[#allocation5_spill] sm:$0xff] %v2286_v28  ;;  %v2288_v20 = vpop.f32.mrb[17].mxu1  ;;  %v1637_v36 = vpop.eup %1636  ;;  %1652 = vrcp.f32 %v1057_v7  ;;  %v1056_v38 = vadd.f32 2.0, %v2277_v10 }
  0xfb   :  { %3107 = vst [vmem:[#allocation6_spill] sm:$0xff] %v2288_v20  ;;  %v2291_v46 = vadd.f32 %v931_v11, %v867_v61  ;;  %v706_v44 = vmin.f32 %v2209_v59, 20.0  ;;  %v1639_v48 = vpop.eup %1638  ;;  %v1119_v14 = vmul.f32 %v1637_v36, %v2224_v21  ;;  %1654 = vrcp.f32 %v1089_v16 }
  0xfc   :  { %v1088_v49 = vadd.f32 2.0, %v2284_v13  ;;  %v2296_v58 = vadd.f32 %v963_v35, %v899_v23  ;;  %v1641_v51 = vpop.eup %1640  ;;  %v1183_v28 = vmul.f32 %v1639_v48, %v2230_v29  ;;  %1656 = vrcp.f32 %v1056_v38  ;;  %v2300_v12 = vpop.f32.mrb[18].mxu0 }
  0xfd   :  { %v1059_v7 = vadd.f32 2.0, %v2291_v46  ;;  %v808_v20 = vmul.f32 1.442695, %v706_v44  ;;  %v2302_v61 = vpop.f32.mrb[18].mxu1  ;;  %v1643_v11 = vpop.eup %1642  ;;  %v1245_v43 = vmul.f32 %v1119_v14, %v2150_v4  ;;  %v1117_v21 = vmul.f32 %v1641_v51, %v2237_v37 }
  0xfe   :  { %1658 = vrcp.f32 %v1088_v49  ;;  %v1091_v16 = vadd.f32 2.0, %v2296_v58  ;;  %v2307_v23 = vpop.f32.mrb[19].mxu0  ;;  %v2309_v35 = vpop.f32.mrb[19].mxu1  ;;  %v1277_v36 = vmul.f32 %v1183_v28, %v2153_v5  ;;  %v1181_v38 = vmul.f32 %v1643_v11, %v2240_v45 }
  0xff   :  { %v1645_v29 = vpop.eup %1644  ;;  %1660 = vrcp.f32 %v1059_v7  ;;  %v677_v44 = vmin.f32 %v2213_v0, 20.0  ;;  %1310 = vst.msk [vmem:[%s3102_s3 + $0x8] sm:$0xff] %vm1308_vm2, %v1245_v43  ;;  %v1244_v4 = vmul.f32 %v1117_v21, %v2156_v8  ;;  %v709_v14 = vmin.f32 %v2216_v2, 20.0 }
 0x100   :  { %v1647_v48 = vpop.eup %1646  ;;  %v1123_v37 = vmul.f32 %v1645_v29, %v2243_v50  ;;  %1662 = vrcp.f32 %v1091_v16  ;;  %1342 = vst.msk [vmem:[%s3102_s3 + $0x108] sm:$0xff] %vm1308_vm2, %v1277_v36  ;;  %v1276_v5 = vmul.f32 %v1181_v38, %v2159_v9  ;;  %v2328_v43 = vpop.f32.mrb[20].mxu0  ;;  %v2339_v9 = vadd.f32 %v2147_v1, %v2218_v3 }
 0x101   :  { %v1187_v45 = vmul.f32 %v1647_v48, %v2250_v60  ;;  %1664 = vpow2.f32 %v2222_v17  ;;  %v750_v28 = vmul.f32 1.442695, %v677_v44  ;;  %v2330_v8 = vpop.f32.mrb[20].mxu1  ;;  %1309 = vst.msk [vmem:[%s3102_s3] sm:$0xff] %vm1308_vm2, %v1244_v4  ;;  %v814_v51 = vmul.f32 1.442695, %v709_v14 }
 0x102   :  { %v1649_v50 = vpop.eup %1648  ;;  %v1247_v49 = vmul.f32 %v1123_v37, %v2166_v18  ;;  %1666 = vpow2.f32 %v808_v20  ;;  %v2341_v17 = vpop.f32.mrb[21].mxu0  ;;  %1341 = vst.msk [vmem:[%s3102_s3 + $0x100] sm:$0xff] %vm1308_vm2, %v1276_v5  ;;  %v2353_v20 = vadd.f32 %v2147_v1, %v2220_v6  ;;  %v676_v21 = vmin.f32 %v2339_v9, 20.0 }
 0x103   :  { %v2343_v60 = vpop.f32.mrb[21].mxu1  ;;  %v1651_v7 = vpop.eup %1650  ;;  %v1279_v11 = vmul.f32 %v1187_v45, %v2169_v19  ;;  %v1121_v18 = vmul.f32 %v1649_v50, %v2258_v15  ;;  %1668 = vpow2.f32 %v750_v28  ;;  %v2363_v19 = vadd.f32 %v2226_v26, %v2147_v1 }
 0x104   :  { %1312 = vst.msk [vmem:[%s3102_s3 + $0x18] sm:$0xff] %vm1308_vm2, %v1247_v49  ;;  %v1185_v3 = vmul.f32 %v1651_v7, %v2260_v22  ;;  %1670 = vpow2.f32 %v814_v51  ;;  %v1653_v15 = vpop.eup %1652  ;;  %v708_v16 = vmin.f32 %v2353_v20, 20.0  ;;  %v2373_v22 = vadd.f32 %v2228_v27, %v2147_v1  ;;  %v2379_v26 = vpop.f32.mrb[22].mxu0 }
 0x105   :  { %1344 = vst.msk [vmem:[%s3102_s3 + $0x118] sm:$0xff] %vm1308_vm2, %v1279_v11  ;;  %v1246_v6 = vmul.f32 %v1121_v18, %v2172_v24  ;;  %v2377_v29 = vadd.f32 %v2147_v1, %v2232_v32  ;;  %v2381_v36 = vpop.f32.mrb[22].mxu1  ;;  %v1655_v38 = vpop.eup %1654  ;;  %v1127_v48 = vmul.f32 %v1653_v15, %v2272_v47  ;;  %v748_v24 = vmul.f32 1.442695, %v676_v21 }
 0x106   :  { %v1278_v44 = vmul.f32 %v1185_v3, %v2175_v25  ;;  %v679_v4 = vmin.f32 %v2363_v19, 20.0  ;;  %v2386_v37 = vpop.f32.mrb[23].mxu0  ;;  %v2388_v27 = vpop.f32.mrb[23].mxu1  ;;  %v1191_v32 = vmul.f32 %v1655_v38, %v2274_v57  ;;  %v812_v5 = vmul.f32 1.442695, %v708_v16 }
 0x107   :  { %v1657_v14 = vpop.eup %1656  ;;  %1311 = vst.msk [vmem:[%s3102_s3 + $0x10] sm:$0xff] %vm1308_vm2, %v1246_v6  ;;  %v711_v25 = vmin.f32 %v2373_v22, 20.0  ;;  %v678_v47 = vmin.f32 %v2377_v29, 20.0  ;;  %v1249_v28 = vmul.f32 %v1127_v48, %v2182_v34  ;;  %1672 = vpow2.f32 %v748_v24 }
 0x108   :  { %v1659_v45 = vpop.eup %1658  ;;  %1343 = vst.msk [vmem:[%s3102_s3 + $0x110] sm:$0xff] %vm1308_vm2, %v1278_v44  ;;  %v1125_v50 = vmul.f32 %v1657_v14, %v2277_v10  ;;  %v754_v49 = vmul.f32 1.442695, %v679_v4  ;;  %v1281_v57 = vmul.f32 %v1191_v32, %v2185_v39  ;;  %1674 = vpow2.f32 %v812_v5  ;;  %v2405_v18 = vpop.f32.mrb[24].mxu0 }
 0x109   :  { %v1661_v51 = vpop.eup %1660  ;;  %v1189_v7 = vmul.f32 %v1659_v45, %v2284_v13  ;;  %v818_v11 = vmul.f32 1.442695, %v711_v25  ;;  %v2407_v3 = vpop.f32.mrb[24].mxu1  ;;  %1314 = vst.msk [vmem:[%s3102_s3 + $0x28] sm:$0xff] %vm1308_vm2, %v1249_v28  ;;  %v752_v39 = vmul.f32 1.442695, %v678_v47 }
 0x10a   :  { %v1663_v21 = vpop.eup %1662  ;;  %v1248_v34 = vmul.f32 %v1125_v50, %v2189_v41  ;;  %v1131_v10 = vmul.f32 %v1661_v51, %v2291_v46  ;;  %1676 = vpow2.f32 %v754_v49  ;;  %v2415_v15 = vpop.f32.mrb[25].mxu0  ;;  %1346 = vst.msk [vmem:[%s3102_s3 + $0x128] sm:$0xff] %vm1308_vm2, %v1281_v57  ;;  %v2427_v41 = vadd.f32 %v2147_v1, %v2234_v33 }
 0x10b   :  { %v2417_v13 = vpop.f32.mrb[25].mxu1  ;;  %v1665_v6 = vpop.eup %1664  ;;  %v1280_v16 = vmul.f32 %v1189_v7, %v2192_v42  ;;  %v1195_v38 = vmul.f32 %v1663_v21, %v2296_v58  ;;  %1678 = vpow2.f32 %v818_v11 }
 0x10c   :  { %v1667_v46 = vpop.eup %1666  ;;  %1313 = vst.msk [vmem:[%s3102_s3 + $0x20] sm:$0xff] %vm1308_vm2, %v1248_v34  ;;  %v1251_v44 = vmul.f32 %v1131_v10, %v2198_v52  ;;  %v866_v48 = vmul.f32 %v1665_v6, %v1665_v6  ;;  %v930_v24 = vmul.f32 2.0, %v1665_v6  ;;  %1680 = vpow2.f32 %v752_v39  ;;  %v2440_v32 = vpop.f32.mrb[26].mxu0 }
 0x10d   :  { %v1669_v4 = vpop.eup %1668  ;;  %1345 = vst.msk [vmem:[%s3102_s3 + $0x120] sm:$0xff] %vm1308_vm2, %v1280_v16  ;;  %v1283_v42 = vmul.f32 %v1195_v38, %v2201_v53  ;;  %v898_v33 = vmul.f32 %v1667_v46, %v1667_v46  ;;  %v962_v58 = vmul.f32 2.0, %v1667_v46  ;;  %v710_v14 = vmin.f32 %v2427_v41, 20.0  ;;  %v2442_v5 = vpop.f32.mrb[26].mxu1 }
 0x10e   :  { %3108 = vst [vmem:[#allocation7_spill] sm:$0xff] %v2442_v5  ;;  %v1671_v52 = vpop.eup %1670  ;;  %1316 = vst.msk [vmem:[%s3102_s3 + $0x38] sm:$0xff] %vm1308_vm2, %v1251_v44  ;;  %v2448_v25 = vadd.f32 %v930_v24, %v866_v48  ;;  %v869_v47 = vmul.f32 %v1669_v4, %v1669_v4  ;;  %v933_v45 = vmul.f32 2.0, %v1669_v4  ;;  %v2452_v53 = vadd.f32 %v2245_v54, %v2147_v1  ;;  %v2454_v28 = vpop.f32.mrb[27].mxu0 }
 0x10f   :  { %3109 = vst [vmem:[#allocation8_spill] sm:$0xff] %v2454_v28  ;;  %v2456_v50 = vpop.f32.mrb[27].mxu1  ;;  %1348 = vst.msk [vmem:[%s3102_s3 + $0x138] sm:$0xff] %vm1308_vm2, %v1283_v42  ;;  %v2462_v49 = vadd.f32 %v962_v58, %v898_v33  ;;  %v901_v51 = vmul.f32 %v1671_v52, %v1671_v52  ;;  %v965_v57 = vmul.f32 2.0, %v1671_v52  ;;  %v816_v7 = vmul.f32 1.442695, %v710_v14 }
 0x110   :  { %3110 = vst [vmem:[#allocation9_spill] sm:$0xff] %v2456_v50  ;;  %v1058_v11 = vadd.f32 2.0, %v2448_v25  ;;  %v2465_v21 = vadd.f32 %v933_v45, %v869_v47  ;;  %v681_v54 = vmin.f32 %v2452_v53, 20.0  ;;  %v2470_v34 = vadd.f32 %v2247_v55, %v2147_v1  ;;  %v2479_v16 = vpop.f32.mrb[28].mxu0  ;;  %v2481_v38 = vpop.f32.mrb[28].mxu1 }
 0x111   :  { %v1090_v10 = vadd.f32 2.0, %v2462_v49  ;;  %v2473_v39 = vadd.f32 %v965_v57, %v901_v51  ;;  %1682 = vpow2.f32 %v816_v7  ;;  %v2477_v6 = vadd.f32 %v2147_v1, %v2252_v62  ;;  %3111 = vst [vmem:[#allocation10_spill] sm:$0xff] %v2479_v16  ;;  %3112 = vst [vmem:[#allocation11_spill] sm:$0xff] %v2481_v38  ;;  %v1673_v46 = vpop.eup %1672  ;;  %v2485_v24 = vpop.f32.mrb[29].mxu0 }
 0x112   :  { %1684 = vrcp.f32 %v1058_v11  ;;  %v1061_v44 = vadd.f32 2.0, %v2465_v21  ;;  %v758_v48 = vmul.f32 1.442695, %v681_v54  ;;  %v713_v55 = vmin.f32 %v2470_v34, 20.0  ;;  %3113 = vst [vmem:[#allocation12_spill] sm:$0xff] %v2485_v24  ;;  %v2487_v4 = vpop.f32.mrb[29].mxu1  ;;  %v1675_v42 = vpop.eup %1674 }
 0x113   :  { %3114 = vst [vmem:[#allocation13_spill] sm:$0xff] %v2487_v4  ;;  %1686 = vrcp.f32 %v1090_v10  ;;  %v1093_v62 = vadd.f32 2.0, %v2473_v39  ;;  %v868_v33 = vmul.f32 %v1673_v46, %v1673_v46  ;;  %v932_v58 = vmul.f32 2.0, %v1673_v46 }
 0x114   :  { %v1677_v14 = vpop.eup %1676  ;;  %1688 = vrcp.f32 %v1061_v44  ;;  %v900_v52 = vmul.f32 %v1675_v42, %v1675_v42  ;;  %v964_v47 = vmul.f32 2.0, %v1675_v42  ;;  %v822_v45 = vmul.f32 1.442695, %v713_v55  ;;  %v2492_v54 = vpop.f32.mrb[30].mxu0 }
 0x115   :  { %v1679_v51 = vpop.eup %1678  ;;  %1690 = vrcp.f32 %v1093_v62  ;;  %v2490_v57 = vadd.f32 %v932_v58, %v868_v33  ;;  %v871_v7 = vmul.f32 %v1677_v14, %v1677_v14  ;;  %v935_v11 = vmul.f32 2.0, %v1677_v14  ;;  %3115 = vst [vmem:[#allocation14_spill] sm:$0xff] %v2492_v54  ;;  %v2494_v4 = vpop.f32.mrb[30].mxu1 }
 0x116   :  { %3116 = vst [vmem:[#allocation15_spill] sm:$0xff] %v2494_v4  ;;  %v1681_v10 = vpop.eup %1680  ;;  %v2496_v24 = vadd.f32 %v964_v47, %v900_v52  ;;  %v903_v38 = vmul.f32 %v1679_v51, %v1679_v51  ;;  %v967_v46 = vmul.f32 2.0, %v1679_v51  ;;  %1692 = vpow2.f32 %v758_v48  ;;  %v2498_v44 = vpop.f32.mrb[31].mxu0 }
 0x117   :  { %3117 = vst [vmem:[#allocation16_spill] sm:$0xff] %v2498_v44  ;;  %v2500_v42 = vpop.f32.mrb[31].mxu1  ;;  %v1060_v55 = vadd.f32 2.0, %v2490_v57  ;;  %v2503_v62 = vadd.f32 %v935_v11, %v871_v7  ;;  %v870_v33 = vmul.f32 %v1681_v10, %v1681_v10  ;;  %v934_v58 = vmul.f32 2.0, %v1681_v10 }
 0x118   :  { %3118 = vst [vmem:[#allocation17_spill] sm:$0xff] %v2500_v42  ;;  %v1092_v14 = vadd.f32 2.0, %v2496_v24  ;;  %v2506_v54 = vadd.f32 %v967_v46, %v903_v38  ;;  %1694 = vpow2.f32 %v822_v45  ;;  %v680_v52 = vmin.f32 %v2477_v6, 20.0 }
 0x119   :  { %1696 = vrcp.f32 %v1060_v55  ;;  %v1063_v48 = vadd.f32 2.0, %v2503_v62  ;;  %v2510_v47 = vadd.f32 %v934_v58, %v870_v33  ;;  %v2514_v51 = vadd.f32 %v2147_v1, %v2254_v63 }
 0x11a   :  { %1698 = vrcp.f32 %v1092_v14  ;;  %v1095_v7 = vadd.f32 2.0, %v2506_v54  ;;  %v756_v11 = vmul.f32 1.442695, %v680_v52  ;;  %v2519_v38 = vadd.f32 %v2262_v30, %v2147_v1 }
 0x11b   :  { %v1683_v45 = vpop.eup %1682  ;;  %1700 = vrcp.f32 %v1063_v48  ;;  %v1062_v10 = vadd.f32 2.0, %v2510_v47  ;;  %v712_v46 = vmin.f32 %v2514_v51, 20.0  ;;  %v2525_v55 = vadd.f32 %v2264_v31, %v2147_v1 }
 0x11c   :  { %v1685_v63 = vpop.eup %1684  ;;  %1702 = vrcp.f32 %v1095_v7  ;;  %v902_v33 = vmul.f32 %v1683_v45, %v1683_v45  ;;  %v966_v58 = vmul.f32 2.0, %v1683_v45  ;;  %v683_v14 = vmin.f32 %v2519_v38, 20.0 }
 0x11d   :  { %v1687_v52 = vpop.eup %1686  ;;  %v1129_v30 = vmul.f32 %v1685_v63, %v2448_v25  ;;  %1704 = vrcp.f32 %v1062_v10  ;;  %v820_v42 = vmul.f32 1.442695, %v712_v46  ;;  %v715_v48 = vmin.f32 %v2525_v55, 20.0 }
 0x11e   :  { %v1689_v44 = vpop.eup %1688  ;;  %v1193_v4 = vmul.f32 %v1687_v52, %v2462_v49  ;;  %v2531_v16 = vadd.f32 %v966_v58, %v902_v33  ;;  %1706 = vpow2.f32 %v756_v11  ;;  %v762_v31 = vmul.f32 1.442695, %v683_v14  ;;  %v3121_v14 = vld [vmem:[#allocation4_spill] sm:$0xff] }
 0x11f   :  { %v1691_v50 = vpop.eup %1690  ;;  %v1250_v7 = vmul.f32 %v1129_v30, %v2204_v56  ;;  %v1135_v45 = vmul.f32 %v1689_v44, %v2465_v21  ;;  %1708 = vpow2.f32 %v820_v42  ;;  %v826_v28 = vmul.f32 1.442695, %v715_v48 }
 0x120   :  { %v1693_v5 = vpop.eup %1692  ;;  %v1282_v25 = vmul.f32 %v1193_v4, %v2209_v59  ;;  %v1199_v10 = vmul.f32 %v1691_v50, %v2473_v39  ;;  %v1094_v46 = vadd.f32 2.0, %v2531_v16  ;;  %1710 = vpow2.f32 %v762_v31  ;;  %v3119_v39 = vld [vmem:[#allocation2_spill] sm:$0xff] }
 0x121   :  { %1315 = vst.msk [vmem:[%s3102_s3 + $0x30] sm:$0xff] %vm1308_vm2, %v1250_v7  ;;  %v1253_v49 = vmul.f32 %v1135_v45, %v2213_v0  ;;  %v873_v56 = vmul.f32 %v1693_v5, %v1693_v5  ;;  %v937_v11 = vmul.f32 2.0, %v1693_v5  ;;  %1712 = vpow2.f32 %v826_v28 }
 0x122   :  { %v1695_v21 = vpop.eup %1694  ;;  %1347 = vst.msk [vmem:[%s3102_s3 + $0x130] sm:$0xff] %vm1308_vm2, %v1282_v25  ;;  %v1285_v59 = vmul.f32 %v1199_v10, %v2216_v2  ;;  %1714 = vrcp.f32 %v1094_v46  ;;  %v2550_v50 = vadd.f32 %v2147_v1, %v2267_v40  ;;  %v2554_v4 = vadd.f32 %v2147_v1, %v3119_v39  ;;  %v3120_v2 = vld [vmem:[#allocation3_spill] sm:$0xff] }
 0x123   :  { %v1697_v0 = vpop.eup %1696  ;;  %1318 = vst.msk [vmem:[%s3102_s3 + $0x48] sm:$0xff] %vm1308_vm2, %v1253_v49  ;;  %v2560_v5 = vadd.f32 %v937_v11, %v873_v56  ;;  %v905_v28 = vmul.f32 %v1695_v21, %v1695_v21  ;;  %v969_v44 = vmul.f32 2.0, %v1695_v21  ;;  %v2564_v42 = vadd.f32 %v3120_v2, %v2147_v1 }
 0x124   :  { %v1699_v40 = vpop.eup %1698  ;;  %1350 = vst.msk [vmem:[%s3102_s3 + $0x148] sm:$0xff] %vm1308_vm2, %v1285_v59  ;;  %v1133_v63 = vmul.f32 %v1697_v0, %v2490_v57  ;;  %v682_v33 = vmin.f32 %v2550_v50, 20.0  ;;  %v714_v58 = vmin.f32 %v2554_v4, 20.0  ;;  %v2575_v52 = vadd.f32 %v3121_v14, %v2147_v1 }
 0x125   :  { %v1701_v30 = vpop.eup %1700  ;;  %v1197_v48 = vmul.f32 %v1699_v40, %v2496_v24  ;;  %v1065_v31 = vadd.f32 2.0, %v2560_v5  ;;  %v2579_v7 = vadd.f32 %v969_v44, %v905_v28  ;;  %v685_v45 = vmin.f32 %v2564_v42, 20.0 }
 0x126   :  { %v1703_v25 = vpop.eup %1702  ;;  %v1252_v57 = vmul.f32 %v1133_v63, %v2339_v9  ;;  %v1139_v10 = vmul.f32 %v1701_v30, %v2503_v62  ;;  %v760_v46 = vmul.f32 1.442695, %v682_v33  ;;  %v824_v49 = vmul.f32 1.442695, %v714_v58 }
 0x127   :  { %v1705_v56 = vpop.eup %1704  ;;  %v1284_v11 = vmul.f32 %v1197_v48, %v2353_v20  ;;  %v1203_v21 = vmul.f32 %v1703_v25, %v2506_v54  ;;  %1716 = vrcp.f32 %v1065_v31  ;;  %v1097_v24 = vadd.f32 2.0, %v2579_v7 }
 0x128   :  { %v1707_v59 = vpop.eup %1706  ;;  %1317 = vst.msk [vmem:[%s3102_s3 + $0x40] sm:$0xff] %vm1308_vm2, %v1252_v57  ;;  %v1255_v9 = vmul.f32 %v1139_v10, %v2363_v19  ;;  %v1137_v62 = vmul.f32 %v1705_v56, %v2510_v47  ;;  %1718 = vpow2.f32 %v760_v46  ;;  %v766_v39 = vmul.f32 1.442695, %v685_v45  ;;  %v3122_v57 = vld [vmem:[#allocation5_spill] sm:$0xff] }
 0x129   :  { %v1709_v0 = vpop.eup %1708  ;;  %1349 = vst.msk [vmem:[%s3102_s3 + $0x140] sm:$0xff] %vm1308_vm2, %v1284_v11  ;;  %v1287_v20 = vmul.f32 %v1203_v21, %v2373_v22  ;;  %1720 = vrcp.f32 %v1097_v24  ;;  %v872_v54 = vmul.f32 %v1707_v59, %v1707_v59  ;;  %v936_v28 = vmul.f32 2.0, %v1707_v59  ;;  %v3123_v11 = vld [vmem:[#allocation6_spill] sm:$0xff] }
 0x12a   :  { %v1711_v44 = vpop.eup %1710  ;;  %1320 = vst.msk [vmem:[%s3102_s3 + $0x58] sm:$0xff] %vm1308_vm2, %v1255_v9  ;;  %v1254_v19 = vmul.f32 %v1137_v62, %v2377_v29  ;;  %v904_v47 = vmul.f32 %v1709_v0, %v1709_v0  ;;  %v968_v2 = vmul.f32 2.0, %v1709_v0  ;;  %1722 = vpow2.f32 %v824_v49 }
 0x12b   :  { %v1713_v40 = vpop.eup %1712  ;;  %1352 = vst.msk [vmem:[%s3102_s3 + $0x158] sm:$0xff] %vm1308_vm2, %v1287_v20  ;;  %v2607_v22 = vadd.f32 %v936_v28, %v872_v54  ;;  %v875_v63 = vmul.f32 %v1711_v44, %v1711_v44  ;;  %v939_v33 = vmul.f32 2.0, %v1711_v44  ;;  %1724 = vpow2.f32 %v766_v39 }
 0x12c   :  { %v1715_v58 = vpop.eup %1714  ;;  %1319 = vst.msk [vmem:[%s3102_s3 + $0x50] sm:$0xff] %vm1308_vm2, %v1254_v19  ;;  %v2613_v29 = vadd.f32 %v968_v2, %v904_v47  ;;  %v907_v14 = vmul.f32 %v1713_v40, %v1713_v40  ;;  %v971_v30 = vmul.f32 2.0, %v1713_v40  ;;  %v717_v48 = vmin.f32 %v2575_v52, 20.0 }
 0x12d   :  { %v1201_v31 = vmul.f32 %v1715_v58, %v2531_v16  ;;  %v1064_v45 = vadd.f32 2.0, %v2607_v22  ;;  %v2618_v25 = vadd.f32 %v939_v33, %v875_v63  ;;  %v2622_v10 = vadd.f32 %v2147_v1, %v3122_v57 }
 0x12e   :  { %v1096_v46 = vadd.f32 2.0, %v2613_v29  ;;  %v2625_v49 = vadd.f32 %v971_v30, %v907_v14  ;;  %v830_v56 = vmul.f32 1.442695, %v717_v48  ;;  %v2629_v21 = vadd.f32 %v2147_v1, %v3123_v11 }
 0x12f   :  { %v1286_v24 = vmul.f32 %v1201_v31, %v2427_v41  ;;  %1726 = vrcp.f32 %v1064_v45  ;;  %v1067_v16 = vadd.f32 2.0, %v2618_v25  ;;  %v684_v59 = vmin.f32 %v2622_v10, 20.0 }
 0x130   :  { %1728 = vrcp.f32 %v1096_v46  ;;  %v1099_v9 = vadd.f32 2.0, %v2625_v49  ;;  %v716_v62 = vmin.f32 %v2629_v21, 20.0  ;;  %v2638_v39 = vadd.f32 %v2300_v12, %v2147_v1 }
 0x131   :  { %v1717_v0 = vpop.eup %1716  ;;  %1351 = vst.msk [vmem:[%s3102_s3 + $0x150] sm:$0xff] %vm1308_vm2, %v1286_v24  ;;  %1730 = vrcp.f32 %v1067_v16  ;;  %v764_v41 = vmul.f32 1.442695, %v684_v59  ;;  %v2646_v20 = vadd.f32 %v2302_v61, %v2147_v1  ;;  %v2650_v54 = vadd.f32 %v2147_v1, %v2307_v23 }
 0x132   :  { %v1719_v28 = vpop.eup %1718  ;;  %v1143_v12 = vmul.f32 %v1717_v0, %v2560_v5  ;;  %1732 = vrcp.f32 %v1099_v9  ;;  %v828_v44 = vmul.f32 1.442695, %v716_v62  ;;  %v687_v19 = vmin.f32 %v2638_v39, 20.0 }
 0x133   :  { %v1721_v47 = vpop.eup %1720  ;;  %v874_v2 = vmul.f32 %v1719_v28, %v1719_v28  ;;  %v938_v40 = vmul.f32 2.0, %v1719_v28  ;;  %1734 = vpow2.f32 %v830_v56  ;;  %v719_v63 = vmin.f32 %v2646_v20, 20.0 }
 0x134   :  { %v1723_v33 = vpop.eup %1722  ;;  %v1257_v61 = vmul.f32 %v1143_v12, %v2452_v53  ;;  %v1207_v58 = vmul.f32 %v1721_v47, %v2579_v7  ;;  %1736 = vpow2.f32 %v764_v41  ;;  %v770_v1 = vmul.f32 1.442695, %v687_v19 }
 0x135   :  { %v1725_v23 = vpop.eup %1724  ;;  %v2657_v14 = vadd.f32 %v938_v40, %v874_v2  ;;  %v906_v5 = vmul.f32 %v1723_v33, %v1723_v33  ;;  %v970_v30 = vmul.f32 2.0, %v1723_v33  ;;  %1738 = vpow2.f32 %v828_v44 }
 0x136   :  { %1322 = vst.msk [vmem:[%s3102_s3 + $0x68] sm:$0xff] %vm1308_vm2, %v1257_v61  ;;  %v1289_v48 = vmul.f32 %v1207_v58, %v2470_v34  ;;  %v877_v31 = vmul.f32 %v1725_v23, %v1725_v23  ;;  %v941_v45 = vmul.f32 2.0, %v1725_v23  ;;  %1740 = vpow2.f32 %v770_v1  ;;  %v2677_v34 = vld [vmem:[%s3101_s2] ss:$0 sm:$0xff] }
 0x137   :  { %v1066_v53 = vadd.f32 2.0, %v2657_v14  ;;  %v2665_v7 = vadd.f32 %v970_v30, %v906_v5  ;;  %v834_v57 = vmul.f32 1.442695, %v719_v63  ;;  %v686_v46 = vmin.f32 %v2650_v54, 20.0 }
 0x138   :  { %1354 = vst.msk [vmem:[%s3102_s3 + $0x168] sm:$0xff] %vm1308_vm2, %v1289_v48  ;;  %v2672_v56 = vadd.f32 %v941_v45, %v877_v31  ;;  %v2681_v11 = vadd.f32 %v2677_v34, %v2309_v35  ;;  %v2685_v24 = vadd.f32 %v2677_v34, %v2328_v43  ;;  %v2689_v16 = vadd.f32 %v2677_v34, %v2330_v8 }
 0x139   :  { %v1727_v59 = vpop.eup %1726  ;;  %1742 = vrcp.f32 %v1066_v53  ;;  %v1098_v9 = vadd.f32 2.0, %v2665_v7  ;;  %v768_v62 = vmul.f32 1.442695, %v686_v46  ;;  %v2694_v0 = vadd.f32 %v2677_v34, %v2341_v17 }
 0x13a   :  { %v1729_v41 = vpop.eup %1728  ;;  %v1141_v35 = vmul.f32 %v1727_v59, %v2607_v22  ;;  %v1069_v28 = vadd.f32 2.0, %v2672_v56  ;;  %1744 = vpow2.f32 %v834_v57  ;;  %v718_v43 = vmin.f32 %v2681_v11, 20.0 }
 0x13b   :  { %v1731_v12 = vpop.eup %1730  ;;  %v1205_v8 = vmul.f32 %v1729_v41, %v2613_v29  ;;  %1746 = vrcp.f32 %v1098_v9  ;;  %v689_v44 = vmin.f32 %v2685_v24, 20.0  ;;  %v721_v19 = vmin.f32 %v2689_v16, 20.0 }
 0x13c   :  { %v1733_v47 = vpop.eup %1732  ;;  %v1256_v17 = vmul.f32 %v1141_v35, %v2477_v6  ;;  %v1147_v2 = vmul.f32 %v1731_v12, %v2618_v25  ;;  %1748 = vrcp.f32 %v1069_v28  ;;  %v832_v22 = vmul.f32 1.442695, %v718_v43 }
 0x13d   :  { %v1735_v40 = vpop.eup %1734  ;;  %v1288_v63 = vmul.f32 %v1205_v8, %v2514_v51  ;;  %v1211_v33 = vmul.f32 %v1733_v47, %v2625_v49  ;;  %1750 = vpow2.f32 %v768_v62  ;;  %v774_v61 = vmul.f32 1.442695, %v689_v44 }
 0x13e   :  { %v1737_v29 = vpop.eup %1736  ;;  %1321 = vst.msk [vmem:[%s3102_s3 + $0x60] sm:$0xff] %vm1308_vm2, %v1256_v17  ;;  %v1259_v58 = vmul.f32 %v1147_v2, %v2519_v38  ;;  %v909_v6 = vmul.f32 %v1735_v40, %v1735_v40  ;;  %v973_v1 = vmul.f32 2.0, %v1735_v40  ;;  %1752 = vpow2.f32 %v832_v22 }
 0x13f   :  { %v1739_v25 = vpop.eup %1738  ;;  %1353 = vst.msk [vmem:[%s3102_s3 + $0x160] sm:$0xff] %vm1308_vm2, %v1288_v63  ;;  %v1291_v51 = vmul.f32 %v1211_v33, %v2525_v55  ;;  %v876_v49 = vmul.f32 %v1737_v29, %v1737_v29  ;;  %v940_v23 = vmul.f32 2.0, %v1737_v29  ;;  %1754 = vpow2.f32 %v774_v61 }
 0x140   :  { %v1741_v5 = vpop.eup %1740  ;;  %1324 = vst.msk [vmem:[%s3102_s3 + $0x78] sm:$0xff] %vm1308_vm2, %v1259_v58  ;;  %v2720_v38 = vadd.f32 %v973_v1, %v909_v6  ;;  %v908_v30 = vmul.f32 %v1739_v25, %v1739_v25  ;;  %v972_v48 = vmul.f32 2.0, %v1739_v25  ;;  %v838_v31 = vmul.f32 1.442695, %v721_v19 }
 0x141   :  { %1356 = vst.msk [vmem:[%s3102_s3 + $0x178] sm:$0xff] %vm1308_vm2, %v1291_v51  ;;  %v2726_v55 = vadd.f32 %v940_v23, %v876_v49  ;;  %v879_v45 = vmul.f32 %v1741_v5, %v1741_v5  ;;  %v943_v53 = vmul.f32 2.0, %v1741_v5  ;;  %v688_v57 = vmin.f32 %v2694_v0, 20.0 }
 0x142   :  { %v1101_v46 = vadd.f32 2.0, %v2720_v38  ;;  %v2730_v59 = vadd.f32 %v972_v48, %v908_v30  ;;  %1756 = vpow2.f32 %v838_v31  ;;  %v2734_v9 = vadd.f32 %v2677_v34, %v2343_v60 }
 0x143   :  { %v1743_v62 = vpop.eup %1742  ;;  %v1068_v41 = vadd.f32 2.0, %v2726_v55  ;;  %v2737_v35 = vadd.f32 %v943_v53, %v879_v45  ;;  %v772_v28 = vmul.f32 1.442695, %v688_v57  ;;  %v2741_v43 = vadd.f32 %v2677_v34, %v2379_v26 }
 0x144   :  { %v1745_v12 = vpop.eup %1744  ;;  %v1145_v8 = vmul.f32 %v1743_v62, %v2657_v14  ;;  %1758 = vrcp.f32 %v1101_v46  ;;  %v1100_v44 = vadd.f32 2.0, %v2730_v59  ;;  %v720_v19 = vmin.f32 %v2734_v9, 20.0 }
 0x145   :  { %v1747_v60 = vpop.eup %1746  ;;  %1760 = vrcp.f32 %v1068_v41  ;;  %v1071_v47 = vadd.f32 2.0, %v2737_v35  ;;  %v911_v17 = vmul.f32 %v1745_v12, %v1745_v12  ;;  %v975_v2 = vmul.f32 2.0, %v1745_v12 }
 0x146   :  { %v1749_v22 = vpop.eup %1748  ;;  %v1258_v40 = vmul.f32 %v1145_v8, %v2550_v50  ;;  %v1209_v26 = vmul.f32 %v1747_v60, %v2665_v7  ;;  %1762 = vrcp.f32 %v1100_v44  ;;  %v836_v63 = vmul.f32 1.442695, %v720_v19 }
 0x147   :  { %v1751_v33 = vpop.eup %1750  ;;  %v1151_v14 = vmul.f32 %v1749_v22, %v2672_v56  ;;  %1764 = vrcp.f32 %v1071_v47  ;;  %v2750_v61 = vadd.f32 %v975_v2, %v911_v17  ;;  %v691_v29 = vmin.f32 %v2741_v43, 20.0 }
 0x148   :  { %v1753_v58 = vpop.eup %1752  ;;  %1323 = vst.msk [vmem:[%s3102_s3 + $0x70] sm:$0xff] %vm1308_vm2, %v1258_v40  ;;  %v1290_v50 = vmul.f32 %v1209_v26, %v2554_v4  ;;  %v878_v6 = vmul.f32 %v1751_v33, %v1751_v33  ;;  %v942_v7 = vmul.f32 2.0, %v1751_v33  ;;  %1766 = vpow2.f32 %v772_v28 }
 0x149   :  { %v1755_v1 = vpop.eup %1754  ;;  %v1261_v25 = vmul.f32 %v1151_v14, %v2564_v42  ;;  %v1103_v56 = vadd.f32 2.0, %v2750_v61  ;;  %v910_v51 = vmul.f32 %v1753_v58, %v1753_v58  ;;  %v974_v49 = vmul.f32 2.0, %v1753_v58 }
 0x14a   :  { %1355 = vst.msk [vmem:[%s3102_s3 + $0x170] sm:$0xff] %vm1308_vm2, %v1290_v50  ;;  %v2764_v23 = vadd.f32 %v942_v7, %v878_v6  ;;  %v881_v5 = vmul.f32 %v1755_v1, %v1755_v1  ;;  %v945_v30 = vmul.f32 2.0, %v1755_v1  ;;  %1768 = vpow2.f32 %v836_v63 }
 0x14b   :  { %1326 = vst.msk [vmem:[%s3102_s3 + $0x88] sm:$0xff] %vm1308_vm2, %v1261_v25  ;;  %1770 = vrcp.f32 %v1103_v56  ;;  %v2770_v4 = vadd.f32 %v974_v49, %v910_v51  ;;  %v778_v42 = vmul.f32 1.442695, %v691_v29  ;;  %v2774_v48 = vadd.f32 %v2677_v34, %v2381_v36 }
 0x14c   :  { %v1757_v31 = vpop.eup %1756  ;;  %v1070_v45 = vadd.f32 2.0, %v2764_v23  ;;  %v2777_v53 = vadd.f32 %v945_v30, %v881_v5  ;;  %v2781_v57 = vadd.f32 %v2677_v34, %v2386_v37  ;;  %v2785_v46 = vadd.f32 %v2677_v34, %v2388_v27 }
 0x14d   :  { %v1102_v62 = vadd.f32 2.0, %v2770_v4  ;;  %v913_v41 = vmul.f32 %v1757_v31, %v1757_v31  ;;  %v977_v28 = vmul.f32 2.0, %v1757_v31  ;;  %1772 = vpow2.f32 %v778_v42 }
 0x14e   :  { %v1759_v36 = vpop.eup %1758  ;;  %1774 = vrcp.f32 %v1070_v45  ;;  %v1073_v12 = vadd.f32 2.0, %v2777_v53  ;;  %v723_v8 = vmin.f32 %v2774_v48, 20.0  ;;  %v690_v44 = vmin.f32 %v2781_v57, 20.0 }
 0x14f   :  { %v1761_v19 = vpop.eup %1760  ;;  %v1215_v37 = vmul.f32 %v1759_v36, %v2720_v38  ;;  %1776 = vrcp.f32 %v1102_v62  ;;  %v2792_v60 = vadd.f32 %v977_v28, %v913_v41  ;;  %v722_v27 = vmin.f32 %v2785_v46, 20.0 }
 0x150   :  { %v1763_v47 = vpop.eup %1762  ;;  %v1149_v17 = vmul.f32 %v1761_v19, %v2726_v55  ;;  %1778 = vrcp.f32 %v1073_v12  ;;  %v842_v2 = vmul.f32 1.442695, %v723_v8  ;;  %v776_v22 = vmul.f32 1.442695, %v690_v44 }
 0x151   :  { %v1765_v40 = vpop.eup %1764  ;;  %v1293_v26 = vmul.f32 %v1215_v37, %v2575_v52  ;;  %v1213_v63 = vmul.f32 %v1763_v47, %v2730_v59  ;;  %v1105_v33 = vadd.f32 2.0, %v2792_v60  ;;  %v840_v14 = vmul.f32 1.442695, %v722_v27 }
 0x152   :  { %v1767_v38 = vpop.eup %1766  ;;  %v1260_v29 = vmul.f32 %v1149_v17, %v2622_v10  ;;  %v1155_v58 = vmul.f32 %v1765_v40, %v2737_v35  ;;  %1780 = vpow2.f32 %v842_v2  ;;  %v2803_v55 = vadd.f32 %v2677_v34, %v2405_v18 }
 0x153   :  { %1358 = vst.msk [vmem:[%s3102_s3 + $0x188] sm:$0xff] %vm1308_vm2, %v1293_v26  ;;  %v1292_v52 = vmul.f32 %v1213_v63, %v2629_v21  ;;  %1782 = vrcp.f32 %v1105_v33  ;;  %v880_v59 = vmul.f32 %v1767_v38, %v1767_v38  ;;  %v944_v50 = vmul.f32 2.0, %v1767_v38  ;;  %v3124_v33 = vld [vmem:[#allocation7_spill] sm:$0xff] }
 0x154   :  { %v1769_v6 = vpop.eup %1768  ;;  %1325 = vst.msk [vmem:[%s3102_s3 + $0x80] sm:$0xff] %vm1308_vm2, %v1260_v29  ;;  %v1263_v10 = vmul.f32 %v1155_v58, %v2638_v39  ;;  %1784 = vpow2.f32 %v776_v22  ;;  %v693_v18 = vmin.f32 %v2803_v55, 20.0  ;;  %v2818_v35 = vadd.f32 %v2677_v34, %v2407_v3 }
 0x155   :  { %v1771_v7 = vpop.eup %1770  ;;  %1357 = vst.msk [vmem:[%s3102_s3 + $0x180] sm:$0xff] %vm1308_vm2, %v1292_v52  ;;  %v2824_v21 = vadd.f32 %v944_v50, %v880_v59  ;;  %v912_v1 = vmul.f32 %v1769_v6, %v1769_v6  ;;  %v976_v25 = vmul.f32 2.0, %v1769_v6  ;;  %1786 = vpow2.f32 %v840_v14 }
 0x156   :  { %1328 = vst.msk [vmem:[%s3102_s3 + $0x98] sm:$0xff] %vm1308_vm2, %v1263_v10  ;;  %v1219_v39 = vmul.f32 %v1771_v7, %v2750_v61  ;;  %v782_v3 = vmul.f32 1.442695, %v693_v18  ;;  %v725_v56 = vmin.f32 %v2818_v35, 20.0  ;;  %v2834_v51 = vadd.f32 %v2677_v34, %v2415_v15 }
 0x157   :  { %v1773_v49 = vpop.eup %1772  ;;  %v1072_v5 = vadd.f32 2.0, %v2824_v21  ;;  %v2837_v30 = vadd.f32 %v976_v25, %v912_v1  ;;  %v2841_v42 = vadd.f32 %v2677_v34, %v2417_v13  ;;  %v2845_v31 = vadd.f32 %v2677_v34, %v2440_v32  ;;  %v3125_v1 = vld [vmem:[#allocation8_spill] sm:$0xff]  ;;  %v3126_v25 = vld [vmem:[#allocation9_spill] sm:$0xff] }
 0x158   :  { %v1775_v61 = vpop.eup %1774  ;;  %v1295_v45 = vmul.f32 %v1219_v39, %v2646_v20  ;;  %v883_v62 = vmul.f32 %v1773_v49, %v1773_v49  ;;  %v947_v41 = vmul.f32 2.0, %v1773_v49  ;;  %1788 = vpow2.f32 %v782_v3  ;;  %v3127_v3 = vld [vmem:[#allocation10_spill] sm:$0xff] }
 0x159   :  { %v1777_v15 = vpop.eup %1776  ;;  %v1153_v28 = vmul.f32 %v1775_v61, %v2764_v23  ;;  %1790 = vrcp.f32 %v1072_v5  ;;  %v1104_v36 = vadd.f32 2.0, %v2837_v30  ;;  %v846_v12 = vmul.f32 1.442695, %v725_v56 }
 0x15a   :  { %v1779_v8 = vpop.eup %1778  ;;  %1360 = vst.msk [vmem:[%s3102_s3 + $0x198] sm:$0xff] %vm1308_vm2, %v1295_v45  ;;  %v1217_v13 = vmul.f32 %v1777_v15, %v2770_v4  ;;  %v2855_v32 = vadd.f32 %v947_v41, %v883_v62  ;;  %v692_v20 = vmin.f32 %v2834_v51, 20.0  ;;  %v724_v44 = vmin.f32 %v2841_v42, 20.0 }
 0x15b   :  { %v1262_v23 = vmul.f32 %v1153_v28, %v2650_v54  ;;  %v1159_v19 = vmul.f32 %v1779_v8, %v2777_v53  ;;  %1792 = vrcp.f32 %v1104_v36  ;;  %v695_v37 = vmin.f32 %v2845_v31, 20.0 }
 0x15c   :  { %v1781_v27 = vpop.eup %1780  ;;  %v1294_v47 = vmul.f32 %v1217_v13, %v2681_v11  ;;  %v1075_v17 = vadd.f32 2.0, %v2855_v32  ;;  %1794 = vpow2.f32 %v846_v12  ;;  %v780_v4 = vmul.f32 1.442695, %v692_v20 }
 0x15d   :  { %v1783_v2 = vpop.eup %1782  ;;  %1327 = vst.msk [vmem:[%s3102_s3 + $0x90] sm:$0xff] %vm1308_vm2, %v1262_v23  ;;  %v1265_v54 = vmul.f32 %v1159_v19, %v2685_v24  ;;  %v915_v22 = vmul.f32 %v1781_v27, %v1781_v27  ;;  %v979_v53 = vmul.f32 2.0, %v1781_v27  ;;  %v844_v40 = vmul.f32 1.442695, %v724_v44 }
 0x15e   :  { %v1785_v26 = vpop.eup %1784  ;;  %1359 = vst.msk [vmem:[%s3102_s3 + $0x190] sm:$0xff] %vm1308_vm2, %v1294_v47  ;;  %v1223_v11 = vmul.f32 %v1783_v2, %v2792_v60  ;;  %1796 = vrcp.f32 %v1075_v17  ;;  %v786_v63 = vmul.f32 1.442695, %v695_v37  ;;  %v2876_v14 = vadd.f32 %v2677_v34, %v3124_v33 }
 0x15f   :  { %v1787_v38 = vpop.eup %1786  ;;  %1330 = vst.msk [vmem:[%s3102_s3 + $0xa8] sm:$0xff] %vm1308_vm2, %v1265_v54  ;;  %v2882_v24 = vadd.f32 %v979_v53, %v915_v22  ;;  %v882_v29 = vmul.f32 %v1785_v26, %v1785_v26  ;;  %v946_v58 = vmul.f32 2.0, %v1785_v26  ;;  %1798 = vpow2.f32 %v780_v4  ;;  %v3128_v22 = vld [vmem:[#allocation11_spill] sm:$0xff] }
 0x160   :  { %v1297_v52 = vmul.f32 %v1223_v11, %v2689_v16  ;;  %v914_v60 = vmul.f32 %v1787_v38, %v1787_v38  ;;  %v978_v59 = vmul.f32 2.0, %v1787_v38  ;;  %1800 = vpow2.f32 %v844_v40  ;;  %v3129_v11 = vld [vmem:[#allocation12_spill] sm:$0xff] }
 0x161   :  { %v1107_v50 = vadd.f32 2.0, %v2882_v24  ;;  %v2886_v6 = vadd.f32 %v946_v58, %v882_v29  ;;  %1802 = vpow2.f32 %v786_v63  ;;  %v727_v10 = vmin.f32 %v2876_v14, 20.0 }
 0x162   :  { %v1789_v18 = vpop.eup %1788  ;;  %1362 = vst.msk [vmem:[%s3102_s3 + $0x1a8] sm:$0xff] %vm1308_vm2, %v1297_v52  ;;  %v2893_v7 = vadd.f32 %v978_v59, %v914_v60  ;;  %v2897_v16 = vadd.f32 %v2677_v34, %v3125_v1  ;;  %v2901_v39 = vadd.f32 %v2677_v34, %v3126_v25  ;;  %v2905_v56 = vadd.f32 %v2677_v34, %v3127_v3 }
 0x163   :  { %v1791_v49 = vpop.eup %1790  ;;  %1804 = vrcp.f32 %v1107_v50  ;;  %v1074_v5 = vadd.f32 2.0, %v2886_v6  ;;  %v885_v61 = vmul.f32 %v1789_v18, %v1789_v18  ;;  %v949_v45 = vmul.f32 2.0, %v1789_v18 }
 0x164   :  { %v1157_v62 = vmul.f32 %v1791_v49, %v2824_v21  ;;  %v1106_v41 = vadd.f32 2.0, %v2893_v7  ;;  %v850_v15 = vmul.f32 1.442695, %v727_v10  ;;  %v694_v28 = vmin.f32 %v2897_v16, 20.0  ;;  %v3130_v49 = vld [vmem:[#allocation13_spill] sm:$0xff] }
 0x165   :  { %v1793_v36 = vpop.eup %1792  ;;  %1806 = vrcp.f32 %v1074_v5  ;;  %v2911_v12 = vadd.f32 %v949_v45, %v885_v61  ;;  %v726_v8 = vmin.f32 %v2901_v39, 20.0  ;;  %v697_v13 = vmin.f32 %v2905_v56, 20.0 }
 0x166   :  { %v1795_v20 = vpop.eup %1794  ;;  %v1264_v44 = vmul.f32 %v1157_v62, %v2694_v0  ;;  %v1221_v23 = vmul.f32 %v1793_v36, %v2837_v30  ;;  %1808 = vrcp.f32 %v1106_v41  ;;  %v784_v21 = vmul.f32 1.442695, %v694_v28 }
 0x167   :  { %v1077_v19 = vadd.f32 2.0, %v2911_v12  ;;  %v917_v37 = vmul.f32 %v1795_v20, %v1795_v20  ;;  %v981_v27 = vmul.f32 2.0, %v1795_v20  ;;  %1810 = vpow2.f32 %v850_v15  ;;  %v3131_v15 = vld [vmem:[#allocation14_spill] sm:$0xff] }
 0x168   :  { %v1797_v47 = vpop.eup %1796  ;;  %1329 = vst.msk [vmem:[%s3102_s3 + $0xa0] sm:$0xff] %vm1308_vm2, %v1264_v44  ;;  %v1296_v17 = vmul.f32 %v1221_v23, %v2734_v9  ;;  %1812 = vpow2.f32 %v784_v21  ;;  %v848_v4 = vmul.f32 1.442695, %v726_v8  ;;  %v790_v0 = vmul.f32 1.442695, %v697_v13 }
 0x169   :  { %v1799_v2 = vpop.eup %1798  ;;  %v1163_v30 = vmul.f32 %v1797_v47, %v2855_v32  ;;  %1814 = vrcp.f32 %v1077_v19  ;;  %v2924_v54 = vadd.f32 %v981_v27, %v917_v37  ;;  %v2928_v53 = vadd.f32 %v2677_v34, %v3128_v22 }
 0x16a   :  { %v1801_v40 = vpop.eup %1800  ;;  %1361 = vst.msk [vmem:[%s3102_s3 + $0x1a0] sm:$0xff] %vm1308_vm2, %v1296_v17  ;;  %v884_v9 = vmul.f32 %v1799_v2, %v1799_v2  ;;  %v948_v26 = vmul.f32 2.0, %v1799_v2  ;;  %1816 = vpow2.f32 %v848_v4  ;;  %v2936_v63 = vadd.f32 %v2677_v34, %v3129_v11 }
 0x16b   :  { %v1803_v32 = vpop.eup %1802  ;;  %v1267_v33 = vmul.f32 %v1163_v30, %v2741_v43  ;;  %v1109_v38 = vadd.f32 2.0, %v2924_v54  ;;  %v916_v29 = vmul.f32 %v1801_v40, %v1801_v40  ;;  %v980_v58 = vmul.f32 2.0, %v1801_v40 }
 0x16c   :  { %v2940_v52 = vadd.f32 %v948_v26, %v884_v9  ;;  %v887_v60 = vmul.f32 %v1803_v32, %v1803_v32  ;;  %v951_v59 = vmul.f32 2.0, %v1803_v32  ;;  %1818 = vpow2.f32 %v790_v0 }
 0x16d   :  { %v1805_v50 = vpop.eup %1804  ;;  %1332 = vst.msk [vmem:[%s3102_s3 + $0xb8] sm:$0xff] %vm1308_vm2, %v1267_v33  ;;  %1820 = vrcp.f32 %v1109_v38  ;;  %v2946_v10 = vadd.f32 %v980_v58, %v916_v29  ;;  %v729_v43 = vmin.f32 %v2928_v53, 20.0  ;;  %v696_v18 = vmin.f32 %v2936_v63, 20.0 }
 0x16e   :  { %v1227_v1 = vmul.f32 %v1805_v50, %v2882_v24  ;;  %v1076_v25 = vadd.f32 2.0, %v2940_v52  ;;  %v2952_v3 = vadd.f32 %v951_v59, %v887_v60  ;;  %v2956_v5 = vadd.f32 %v2677_v34, %v3130_v49  ;;  %v3133_v50 = vld [vmem:[#allocation16_spill] sm:$0xff] }
 0x16f   :  { %v1807_v61 = vpop.eup %1806  ;;  %v1108_v45 = vadd.f32 2.0, %v2946_v10  ;;  %v854_v62 = vmul.f32 1.442695, %v729_v43  ;;  %v788_v41 = vmul.f32 1.442695, %v696_v18  ;;  %v2961_v28 = vadd.f32 %v2677_v34, %v3131_v15 }
 0x170   :  { %v1809_v36 = vpop.eup %1808  ;;  %v1299_v24 = vmul.f32 %v1227_v1, %v2774_v48  ;;  %v1161_v8 = vmul.f32 %v1807_v61, %v2886_v6  ;;  %1822 = vrcp.f32 %v1076_v25  ;;  %v1079_v13 = vadd.f32 2.0, %v2952_v3  ;;  %v3134_v25 = vld [vmem:[#allocation17_spill] sm:$0xff] }
 0x171   :  { %v1811_v20 = vpop.eup %1810  ;;  %v1225_v44 = vmul.f32 %v1809_v36, %v2893_v7  ;;  %1824 = vrcp.f32 %v1108_v45  ;;  %v728_v23 = vmin.f32 %v2956_v5, 20.0  ;;  %v699_v21 = vmin.f32 %v2961_v28, 20.0 }
 0x172   :  { %v1813_v19 = vpop.eup %1812  ;;  %1364 = vst.msk [vmem:[%s3102_s3 + $0x1b8] sm:$0xff] %vm1308_vm2, %v1299_v24  ;;  %v1266_v48 = vmul.f32 %v1161_v8, %v2781_v57  ;;  %1826 = vrcp.f32 %v1079_v13  ;;  %v919_v6 = vmul.f32 %v1811_v20, %v1811_v20  ;;  %v983_v37 = vmul.f32 2.0, %v1811_v20 }
 0x173   :  { %v1815_v27 = vpop.eup %1814  ;;  %v1298_v47 = vmul.f32 %v1225_v44, %v2785_v46  ;;  %v886_v7 = vmul.f32 %v1813_v19, %v1813_v19  ;;  %v950_v17 = vmul.f32 2.0, %v1813_v19  ;;  %1828 = vpow2.f32 %v854_v62 }
 0x174   :  { %v1817_v4 = vpop.eup %1816  ;;  %1331 = vst.msk [vmem:[%s3102_s3 + $0xb0] sm:$0xff] %vm1308_vm2, %v1266_v48  ;;  %v1167_v0 = vmul.f32 %v1815_v27, %v2911_v12  ;;  %v2980_v2 = vadd.f32 %v983_v37, %v919_v6  ;;  %1830 = vpow2.f32 %v788_v41  ;;  %v852_v57 = vmul.f32 1.442695, %v728_v23  ;;  %v3132_v12 = vld [vmem:[#allocation15_spill] sm:$0xff] }
 0x175   :  { %1363 = vst.msk [vmem:[%s3102_s3 + $0x1b0] sm:$0xff] %vm1308_vm2, %v1298_v47  ;;  %v2986_v46 = vadd.f32 %v950_v17, %v886_v7  ;;  %v918_v30 = vmul.f32 %v1817_v4, %v1817_v4  ;;  %v982_v22 = vmul.f32 2.0, %v1817_v4  ;;  %v794_v40 = vmul.f32 1.442695, %v699_v21 }
 0x176   :  { %v1819_v9 = vpop.eup %1818  ;;  %v1269_v26 = vmul.f32 %v1167_v0, %v2803_v55  ;;  %v1111_v11 = vadd.f32 2.0, %v2980_v2  ;;  %1832 = vpow2.f32 %v852_v57  ;;  %v2992_v32 = vadd.f32 %v2677_v34, %v3132_v12 }
 0x177   :  { %v1821_v33 = vpop.eup %1820  ;;  %v1078_v38 = vadd.f32 2.0, %v2986_v46  ;;  %v2995_v29 = vadd.f32 %v982_v22, %v918_v30  ;;  %v889_v58 = vmul.f32 %v1819_v9, %v1819_v9  ;;  %v953_v60 = vmul.f32 2.0, %v1819_v9 }
 0x178   :  { %1334 = vst.msk [vmem:[%s3102_s3 + $0xc8] sm:$0xff] %vm1308_vm2, %v1269_v26  ;;  %v1231_v55 = vmul.f32 %v1821_v33, %v2924_v54  ;;  %1834 = vrcp.f32 %v1111_v11  ;;  %v731_v59 = vmin.f32 %v2992_v32, 20.0  ;;  %v3005_v43 = vadd.f32 %v2677_v34, %v3133_v50 }
 0x179   :  { %1836 = vrcp.f32 %v1078_v38  ;;  %v1110_v18 = vadd.f32 2.0, %v2995_v29  ;;  %v3008_v1 = vadd.f32 %v953_v60, %v889_v58  ;;  %v3012_v49 = vadd.f32 %v2677_v34, %v3134_v25 }
 0x17a   :  { %v1823_v61 = vpop.eup %1822  ;;  %v1301_v45 = vmul.f32 %v1231_v55, %v2818_v35  ;;  %1838 = vpow2.f32 %v794_v40  ;;  %v858_v54 = vmul.f32 1.442695, %v731_v59  ;;  %v698_v62 = vmin.f32 %v3005_v43, 20.0 }
 0x17b   :  { %v1825_v41 = vpop.eup %1824  ;;  %v1165_v15 = vmul.f32 %v1823_v61, %v2940_v52  ;;  %1840 = vrcp.f32 %v1110_v18  ;;  %v1081_v36 = vadd.f32 2.0, %v3008_v1  ;;  %v730_v24 = vmin.f32 %v3012_v49, 20.0 }
 0x17c   :  { %v1827_v8 = vpop.eup %1826  ;;  %1366 = vst.msk [vmem:[%s3102_s3 + $0x1c8] sm:$0xff] %vm1308_vm2, %v1301_v45  ;;  %v1229_v34 = vmul.f32 %v1825_v41, %v2946_v10  ;;  %1842 = vpow2.f32 %v858_v54  ;;  %v792_v35 = vmul.f32 1.442695, %v698_v62 }
 0x17d   :  { %v1829_v13 = vpop.eup %1828  ;;  %v1268_v20 = vmul.f32 %v1165_v15, %v2834_v51  ;;  %v1171_v52 = vmul.f32 %v1827_v8, %v2952_v3  ;;  %1844 = vrcp.f32 %v1081_v36  ;;  %v856_v44 = vmul.f32 1.442695, %v730_v24 }
 0x17e   :  { %v1831_v23 = vpop.eup %1830  ;;  %v1300_v21 = vmul.f32 %v1229_v34, %v2841_v42  ;;  %v921_v19 = vmul.f32 %v1829_v13, %v1829_v13  ;;  %v985_v48 = vmul.f32 2.0, %v1829_v13  ;;  %1846 = vpow2.f32 %v792_v35 }
 0x17f   :  { %1333 = vst.msk [vmem:[%s3102_s3 + $0xc0] sm:$0xff] %vm1308_vm2, %v1268_v20  ;;  %v1271_v10 = vmul.f32 %v1171_v52, %v2845_v31  ;;  %v888_v6 = vmul.f32 %v1831_v23, %v1831_v23  ;;  %v952_v37 = vmul.f32 2.0, %v1831_v23  ;;  %1848 = vpow2.f32 %v856_v44 }
 0x180   :  { %v1833_v51 = vpop.eup %1832  ;;  %1365 = vst.msk [vmem:[%s3102_s3 + $0x1c0] sm:$0xff] %vm1308_vm2, %v1300_v21  ;;  %v1049_v42 = vadd.f32 %v985_v48, %v921_v19 }
 0x181   :  { %1336 = vst.msk [vmem:[%s3102_s3 + $0xd8] sm:$0xff] %vm1308_vm2, %v1271_v10  ;;  %v1016_v3 = vadd.f32 %v952_v37, %v888_v6  ;;  %v920_v27 = vmul.f32 %v1833_v51, %v1833_v51  ;;  %v984_v47 = vmul.f32 2.0, %v1833_v51 }
 0x182   :  { %v1835_v7 = vpop.eup %1834  ;;  %v1113_v31 = vadd.f32 2.0, %v1049_v42 }
 0x183   :  { %v1837_v17 = vpop.eup %1836  ;;  %v1235_v4 = vmul.f32 %v1835_v7, %v2980_v2  ;;  %v1080_v0 = vadd.f32 2.0, %v1016_v3  ;;  %v1048_v57 = vadd.f32 %v984_v47, %v920_v27 }
 0x184   :  { %v1839_v30 = vpop.eup %1838  ;;  %v1169_v22 = vmul.f32 %v1837_v17, %v2986_v46  ;;  %1850 = vrcp.f32 %v1113_v31 }
 0x185   :  { %v1841_v40 = vpop.eup %1840  ;;  %v1303_v9 = vmul.f32 %v1235_v4, %v2876_v14  ;;  %1852 = vrcp.f32 %v1080_v0  ;;  %v1112_v26 = vadd.f32 2.0, %v1048_v57  ;;  %v891_v11 = vmul.f32 %v1839_v30, %v1839_v30 }
 0x186   :  { %v1843_v12 = vpop.eup %1842  ;;  %v1270_v33 = vmul.f32 %v1169_v22, %v2897_v16  ;;  %v1233_v38 = vmul.f32 %v1841_v40, %v2995_v29  ;;  %v955_v58 = vmul.f32 2.0, %v1839_v30 }
 0x187   :  { %v1845_v60 = vpop.eup %1844  ;;  %1368 = vst.msk [vmem:[%s3102_s3 + $0x1d8] sm:$0xff] %vm1308_vm2, %v1303_v9  ;;  %1854 = vrcp.f32 %v1112_v26  ;;  %v923_v2 = vmul.f32 %v1843_v12, %v1843_v12  ;;  %v987_v46 = vmul.f32 2.0, %v1843_v12 }
 0x188   :  { %v1847_v55 = vpop.eup %1846  ;;  %1335 = vst.msk [vmem:[%s3102_s3 + $0xd0] sm:$0xff] %vm1308_vm2, %v1270_v33  ;;  %v1302_v14 = vmul.f32 %v1233_v38, %v2901_v39  ;;  %v1175_v16 = vmul.f32 %v1845_v60, %v3008_v1  ;;  %v1019_v29 = vadd.f32 %v955_v58, %v891_v11 }
 0x189   :  { %v1849_v59 = vpop.eup %1848  ;;  %v1051_v50 = vadd.f32 %v987_v46, %v923_v2  ;;  %v890_v18 = vmul.f32 %v1847_v55, %v1847_v55  ;;  %v954_v25 = vmul.f32 2.0, %v1847_v55 }
 0x18a   :  { %1367 = vst.msk [vmem:[%s3102_s3 + $0x1d0] sm:$0xff] %vm1308_vm2, %v1302_v14  ;;  %v1273_v61 = vmul.f32 %v1175_v16, %v2905_v56  ;;  %v1083_v45 = vadd.f32 2.0, %v1019_v29  ;;  %v922_v54 = vmul.f32 %v1849_v59, %v1849_v59  ;;  %v986_v62 = vmul.f32 2.0, %v1849_v59 }
 0x18b   :  { %v1115_v41 = vadd.f32 2.0, %v1051_v50  ;;  %v1018_v15 = vadd.f32 %v954_v25, %v890_v18 }
 0x18c   :  { %1338 = vst.msk [vmem:[%s3102_s3 + $0xe8] sm:$0xff] %vm1308_vm2, %v1273_v61  ;;  %1856 = vrcp.f32 %v1083_v45  ;;  %v1050_v39 = vadd.f32 %v986_v62, %v922_v54 }
 0x18d   :  { %1858 = vrcp.f32 %v1115_v41  ;;  %v1082_v1 = vadd.f32 2.0, %v1018_v15 }
 0x18e   :  { %v1851_v36 = vpop.eup %1850  ;;  %v1114_v24 = vadd.f32 2.0, %v1050_v39 }
 0x18f   :  { %v1853_v8 = vpop.eup %1852  ;;  %v1239_v34 = vmul.f32 %v1851_v36, %v1049_v42  ;;  %1860 = vrcp.f32 %v1082_v1 }
 0x190   :  { %v1173_v56 = vmul.f32 %v1853_v8, %v1016_v3  ;;  %1862 = vrcp.f32 %v1114_v24 }
 0x191   :  { %v1855_v35 = vpop.eup %1854  ;;  %v1305_v13 = vmul.f32 %v1239_v34, %v2928_v53 }
 0x192   :  { %v1272_v20 = vmul.f32 %v1173_v56, %v2936_v63  ;;  %v1237_v52 = vmul.f32 %v1855_v35, %v1048_v57 }
 0x193   :  { %1370 = vst.msk [vmem:[%s3102_s3 + $0x1e8] sm:$0xff] %vm1308_vm2, %v1305_v13 }
 0x194   :  { %1337 = vst.msk [vmem:[%s3102_s3 + $0xe0] sm:$0xff] %vm1308_vm2, %v1272_v20  ;;  %v1304_v44 = vmul.f32 %v1237_v52, %v2956_v5 }
 0x196   :  { %v1857_v23 = vpop.eup %1856  ;;  %1369 = vst.msk [vmem:[%s3102_s3 + $0x1e0] sm:$0xff] %vm1308_vm2, %v1304_v44 }
 0x197   :  { %v1859_v53 = vpop.eup %1858  ;;  %v1179_v63 = vmul.f32 %v1857_v23, %v1019_v29 }
 0x198   :  { %v1243_v21 = vmul.f32 %v1859_v53, %v1051_v50 }
 0x199   :  { %v1861_v19 = vpop.eup %1860  ;;  %v1275_v48 = vmul.f32 %v1179_v63, %v2961_v28 }
 0x19a   :  { %v1863_v10 = vpop.eup %1862  ;;  %v1307_v6 = vmul.f32 %v1243_v21, %v2992_v32  ;;  %v1177_v37 = vmul.f32 %v1861_v19, %v1018_v15 }
 0x19b   :  { %1340 = vst.msk [vmem:[%s3102_s3 + $0xf8] sm:$0xff] %vm1308_vm2, %v1275_v48  ;;  %v1241_v5 = vmul.f32 %v1863_v10, %v1050_v39 }
 0x19c   :  { %1372 = vst.msk [vmem:[%s3102_s3 + $0x1f8] sm:$0xff] %vm1308_vm2, %v1307_v6  ;;  %v1274_v51 = vmul.f32 %v1177_v37, %v3005_v43 }
 0x19d   :  { %v1306_v42 = vmul.f32 %v1241_v5, %v3012_v49 }
 0x19e   :  { %1339 = vst.msk [vmem:[%s3102_s3 + $0xf0] sm:$0xff] %vm1308_vm2, %v1274_v51 }
 0x19f   :  { %1371 = vst.msk [vmem:[%s3102_s3 + $0x1f0] sm:$0xff] %vm1308_vm2, %v1306_v42 }

</bundles_post_ra>
